<compile_context>
chip_gen: v6e
topology: v6e:2x2x1
jax: 0.10.0
libtpu: 0.0.40
codegen_flags: <defaults>
</compile_context>

<pallas_src>
import jax
import jax.numpy as jnp
from jax.experimental import pallas as pl
from jax.experimental.pallas import tpu as pltpu

NEG_SLOPE = 0.01            # nn.LeakyReLU default
BN_EPS = 1e-5               # nn.BatchNorm1d default
ACT_DTYPE = jnp.bfloat16    # MXU operand / h1 intermediate storage dtype


def _detect_vmem_capacity_bytes():
    """Physical VMEM per TensorCore: 128 MiB (v5e/v6e), 64 MiB (v7x)."""
    try:
        return int(pltpu.get_tpu_info().vmem_capacity_bytes)
    except Exception:
        pass
    try:
        kind = jax.devices()[0].device_kind.lower()
        if "v7" in kind:
            return 64 * 1024 * 1024
        return 128 * 1024 * 1024
    except Exception:
        return 64 * 1024 * 1024


_VMEM_CAPACITY = _detect_vmem_capacity_bytes()
# ~96 MiB scoped limit on 128 MiB parts (v5e/v6e), ~48 MiB on 64 MiB parts (v7x).
VMEM_LIMIT = min((_VMEM_CAPACITY * 3) // 4, 110 * 1024 * 1024)


def _leaky_relu(x):
    return jnp.where(x >= 0, x, NEG_SLOPE * x)


# ---------------------------------------------------------------------------
# Kernels
# ---------------------------------------------------------------------------
def _pass1_kernel(x_ref, w1_ref, h1_ref, sum1_ref, sq1_ref):
    # x_ref: (C, TL) f32   w1_ref: (C, C) bf16   h1_ref: (C, TL) bf16
    # sum1_ref / sq1_ref: per-n (C, 1) f32 partial-stat accumulators (resident across l).
    @pl.when(pl.program_id(1) == 0)
    def _():
        sum1_ref[...] = jnp.zeros_like(sum1_ref)
        sq1_ref[...] = jnp.zeros_like(sq1_ref)

    h = jnp.dot(w1_ref[...], x_ref[...].astype(w1_ref.dtype),
                preferred_element_type=jnp.float32)              # MXU, f32 accumulate
    h1_ref[...] = h.astype(h1_ref.dtype)
    sum1_ref[...] += jnp.sum(h, axis=1, keepdims=True)           # XLU lane reduce (free slot)
    sq1_ref[...] += jnp.sum(h * h, axis=1, keepdims=True)


def _pass2_kernel(h1_ref, ss1_ref, w2_ref, sum2_ref, sq2_ref):
    # Stats-only pass: h2 is recomputed in pass 3 instead of being round-tripped through HBM.
    @pl.when(pl.program_id(1) == 0)
    def _():
        sum2_ref[...] = jnp.zeros_like(sum2_ref)
        sq2_ref[...] = jnp.zeros_like(sq2_ref)

    ss = ss1_ref[...]                                            # (C, 2): [scale, shift]
    a = _leaky_relu(h1_ref[...].astype(jnp.float32) * ss[:, 0:1] + ss[:, 1:2])
    h = jnp.dot(w2_ref[...], a.astype(w2_ref.dtype),
                preferred_element_type=jnp.float32)
    sum2_ref[...] += jnp.sum(h, axis=1, keepdims=True)
    sq2_ref[...] += jnp.sum(h * h, axis=1, keepdims=True)


def _pass3_kernel(h1_ref, x_ref, ss1_ref, ss2_ref, w2_ref, o_ref):
    # out = leaky(BN2(conv2(leaky(BN1(h1)))) + identity); pure map -> both grid axes parallel.
    s1 = ss1_ref[...]
    s2 = ss2_ref[...]
    a = _leaky_relu(h1_ref[...].astype(jnp.float32) * s1[:, 0:1] + s1[:, 1:2])
    h2 = jnp.dot(w2_ref[...], a.astype(w2_ref.dtype),
                 preferred_element_type=jnp.float32)
    y = h2 * s2[:, 0:1] + s2[:, 1:2] + x_ref[...]
    o_ref[...] = _leaky_relu(y)


# ---------------------------------------------------------------------------
# Wrapper
# ---------------------------------------------------------------------------
def _pick_lane_tile(L, C, vmem_limit):
    """Largest 128-multiple TL dividing L whose live working set fits the VMEM budget.

    Heaviest pass (pass 3) live bytes per element of a (C, TL) tile:
      double-buffered inputs  h1 bf16 (2*2B) + x f32 (2*4B) = 12 B
      double-buffered output  out f32 (2*4B)                =  8 B
      f32 temporaries (a, h2)                               ~  8 B
    """
    bytes_per_elem = 28
    budget = int(vmem_limit * 0.7)          # headroom: 2x weights, stats, compiler scratch
    tl_max = max((budget // (bytes_per_elem * C)) // 128 * 128, 128)
    if L <= tl_max:
        return L                             # full length as one lane-dense tile
    t = tl_max
    while t >= 128:
        if L % t == 0:
            return t
        t -= 128
    return L                                 # no aligned divisor; fall back to full length


def _fold_bn(sum_, sumsq, conv_b, gamma, beta, count):
    """Fold conv bias + training-mode BatchNorm into per-channel y = h*scale + shift,
    where h = W @ x (bias excluded). BN(h + b) has mean mean_h + b, so the conv bias
    cancels exactly. sum_/sumsq are per-n partials of shape (N, C, 1)."""
    del conv_b                                                   # cancels under batch-stat BN
    s = jnp.sum(sum_, axis=0)[:, 0]                              # (C,)
    q = jnp.sum(sumsq, axis=0)[:, 0]
    mean = s / count
    var = jnp.maximum(q / count - mean * mean, 0.0)              # biased var (PyTorch), clamped
    scale = gamma * jax.lax.rsqrt(var + BN_EPS)
    shift = beta - mean * scale
    return jnp.stack([scale, shift], axis=1).astype(jnp.float32)  # (C, 2)


@jax.jit
def resnet_basic_block(x_ncl, params):
    """x_ncl: (N, C, L) float32 in PyTorch NCL layout. Returns (N, C, L) float32."""
    N, C, L = x_ncl.shape
    TL = _pick_lane_tile(L, C, VMEM_LIMIT)
    n_l = L // TL
    M = N * L
    w1, b1, g1, be1, w2, b2, g2, be2 = params
    w1b = w1.astype(ACT_DTYPE)
    w2b = w2.astype(ACT_DTYPE)

    # (N, C, L) viewed per tile as (C, TL): channels on sublanes, length on lanes.
    act = pl.BlockSpec((pl.Squeezed(), C, TL), lambda n, l: (n, 0, l))
    wgt = pl.BlockSpec((C, C), lambda n, l: (0, 0))
    ssp = pl.BlockSpec((C, 2), lambda n, l: (0, 0))
    # Per-n partial stat accumulators: one (C, 1) block per n, resident across the l axis.
    stat = pl.BlockSpec((pl.Squeezed(), C, 1), lambda n, l: (n, 0, 0))

    stats_params = pltpu.CompilerParams(
        dimension_semantics=("parallel", "arbitrary"),   # per-n partials -> N splits across TCs
        vmem_limit_bytes=VMEM_LIMIT)
    map_params = pltpu.CompilerParams(
        dimension_semantics=("parallel", "parallel"),
        vmem_limit_bytes=VMEM_LIMIT)

    stat_shape = jax.ShapeDtypeStruct((N, C, 1), jnp.float32)

    # ---- pass 1: h1 = conv1(x) (bias folded away); per-n BN1 statistics ----
    h1, s1, q1 = pl.pallas_call(
        _pass1_kernel,
        grid=(N, n_l),
        in_specs=[act, wgt],
        out_specs=[act, stat, stat],
        out_shape=(jax.ShapeDtypeStruct((N, C, L), ACT_DTYPE), stat_shape, stat_shape),
        compiler_params=stats_params,
        cost_estimate=pl.CostEstimate(flops=2 * C * C * M + 3 * C * M, transcendentals=0,
                                      bytes_accessed=6 * C * M),
    )(x_ncl, w1b)

    ss1 = _fold_bn(s1, q1, b1, g1, be1, M)

    # ---- pass 2: stats-only sweep of h2 = conv2(leaky(BN1(h1))); h2 not materialized ----
    s2, q2 = pl.pallas_call(
        _pass2_kernel,
        grid=(N, n_l),
        in_specs=[act, ssp, wgt],
        out_specs=[stat, stat],
        out_shape=(stat_shape, stat_shape),
        compiler_params=stats_params,
        cost_estimate=pl.CostEstimate(flops=2 * C * C * M + 7 * C * M, transcendentals=0,
                                      bytes_accessed=2 * C * M),
    )(h1, ss1, w2b)

    ss2 = _fold_bn(s2, q2, b2, g2, be2, M)

    # ---- pass 3: recompute a and h2 from h1, apply BN2 + residual + leaky ----
    out = pl.pallas_call(
        _pass3_kernel,
        grid=(N, n_l),
        in_specs=[act, act, ssp, ssp, wgt],
        out_specs=act,
        out_shape=jax.ShapeDtypeStruct((N, C, L), jnp.float32),
        compiler_params=map_params,
        cost_estimate=pl.CostEstimate(flops=2 * C * C * M + 10 * C * M, transcendentals=0,
                                      bytes_accessed=10 * C * M),
    )(h1, x_ncl, ss1, ss2, w2b)

    return out


def init_params(key, inplanes, planes):
    """Synthetic parameters matching the module's shapes (PyTorch default inits for BN)."""
    k1, k2, k3, k4 = jax.random.split(key, 4)
    bound1 = 1.0 / (inplanes ** 0.5)
    bound2 = 1.0 / (planes ** 0.5)
    w1 = jax.random.uniform(k1, (planes, inplanes), jnp.float32, -bound1, bound1)
    b1 = jax.random.uniform(k2, (planes,), jnp.float32, -bound1, bound1)
    w2 = jax.random.uniform(k3, (planes, planes), jnp.float32, -bound2, bound2)
    b2 = jax.random.uniform(k4, (planes,), jnp.float32, -bound2, bound2)
    g1 = jnp.ones((planes,), jnp.float32)
    be1 = jnp.zeros((planes,), jnp.float32)
    g2 = jnp.ones((planes,), jnp.float32)
    be2 = jnp.zeros((planes,), jnp.float32)
    return (w1, b1, g1, be1, w2, b2, g2, be2)


if __name__ == "__main__":
    # Small shapes (inplanes == planes so the residual add is valid). With the byte-budget
    # tile picker, L=1024 becomes a single lane-dense tile per batch sample -> grid (2, 1).
    N, C, L = 2, 16, 1024
    key = jax.random.PRNGKey(0)
    kx, kp = jax.random.split(key)
    x = jax.random.normal(kx, (N, C, L), jnp.float32)
    params = init_params(kp, inplanes=C, planes=C)

    out = jax.block_until_ready(resnet_basic_block(x, params))

    # Pure-f32 JAX reference of the exact module math (conv bias included, training-mode BN).
    def ref(x_in):
        w1, b1, g1, be1, w2, b2, g2, be2 = params
        conv = lambda t, w, b: jnp.einsum('oc,ncl->nol', w, t) + b[None, :, None]

        def bn(t, g, be):
            m = t.mean(axis=(0, 2), keepdims=True)
            v = t.var(axis=(0, 2), keepdims=True)            # biased variance (PyTorch)
            return (t - m) * jax.lax.rsqrt(v + BN_EPS) * g[None, :, None] + be[None, :, None]

        o = _leaky_relu(bn(conv(x_in, w1, b1), g1, be1))
        o = bn(conv(o, w2, b2), g2, be2) + x_in
        return _leaky_relu(o)

    # bf16 MXU operands / bf16 h1 intermediate -> compare against the f32 reference loosely.
    r = ref(x)
    assert jnp.allclose(out, r, atol=5e-2, rtol=5e-2), float(jnp.max(jnp.abs(out - r)))
    print("KERNEL_OK")
</pallas_src>

<mosaic_0001>
module attributes {stable_mosaic.version = 11 : i64} {
  func.func @_pass1_kernel(%arg0: i32, %arg1: i32, %arg2: memref<1x16x1024xf32, #tpu.memory_space<vmem>>, %arg3: memref<16x16xbf16, #tpu.memory_space<vmem>>, %arg4: memref<1x16x1024xbf16, #tpu.memory_space<vmem>>, %arg5: memref<1x16x1xf32, #tpu.memory_space<vmem>>, %arg6: memref<1x16x1xf32, #tpu.memory_space<vmem>>) attributes {dimension_semantics = [#tpu.dimension_semantics<parallel>, #tpu.dimension_semantics<arbitrary>], iteration_bounds = array<i64: 2, 1>, scalar_prefetch = 0 : i64, scratch_operands = 0 : i64, tpu.core_type = #tpu.core_type<tc>, window_params = [{transform_indices = @transform_0, window_bounds = array<i64: 1, 16, 1024>}, {pipeline_mode = #tpu.pipeline_mode<synchronous>, transform_indices = @transform_1, window_bounds = array<i64: 16, 16>}, {transform_indices = @transform_2, window_bounds = array<i64: 1, 16, 1024>}, {transform_indices = @transform_3, window_bounds = array<i64: 1, 16, 1>}, {transform_indices = @transform_4, window_bounds = array<i64: 1, 16, 1>}]} {
    %c0_i32 = arith.constant 0 : i32
    %0 = arith.cmpi eq, %arg1, %c0_i32 : i32
    %1 = arith.extui %0 : i1 to i32
    %c0_i32_0 = arith.constant 0 : i32
    %2 = arith.cmpi ne, %1, %c0_i32_0 : i32
    scf.if %2 {
      %cst_22 = arith.constant 0.000000e+00 : f32
      %29 = vector.broadcast %cst_22 : f32 to vector<16x1xf32>
      %c0_23 = arith.constant 0 : index
      %c0_24 = arith.constant 0 : index
      %c0_25 = arith.constant 0 : index
      %30 = vector.load %arg5[%c0_23, %c0_24, %c0_25] : memref<1x16x1xf32, #tpu.memory_space<vmem>>, vector<1x16x1xf32>
      %31 = vector.shape_cast %30 : vector<1x16x1xf32> to vector<16x1xf32>
      %32 = vector.shape_cast %29 : vector<16x1xf32> to vector<1x16x1xf32>
      tpu.vector_store %arg5[%c0_23, %c0_24, %c0_25], %32 {strides = array<i32>} : memref<1x16x1xf32, #tpu.memory_space<vmem>>, vector<1x16x1xf32>,
      %cst_26 = arith.constant 0.000000e+00 : f32
      %33 = vector.broadcast %cst_26 : f32 to vector<16x1xf32>
      %c0_27 = arith.constant 0 : index
      %c0_28 = arith.constant 0 : index
      %c0_29 = arith.constant 0 : index
      %34 = vector.load %arg6[%c0_27, %c0_28, %c0_29] : memref<1x16x1xf32, #tpu.memory_space<vmem>>, vector<1x16x1xf32>
      %35 = vector.shape_cast %34 : vector<1x16x1xf32> to vector<16x1xf32>
      %36 = vector.shape_cast %33 : vector<16x1xf32> to vector<1x16x1xf32>
      tpu.vector_store %arg6[%c0_27, %c0_28, %c0_29], %36 {strides = array<i32>} : memref<1x16x1xf32, #tpu.memory_space<vmem>>, vector<1x16x1xf32>,
    } else {
    }
    %c0 = arith.constant 0 : index
    %c0_1 = arith.constant 0 : index
    %3 = vector.load %arg3[%c0, %c0_1] : memref<16x16xbf16, #tpu.memory_space<vmem>>, vector<16x16xbf16>
    %c0_2 = arith.constant 0 : index
    %c0_3 = arith.constant 0 : index
    %c0_4 = arith.constant 0 : index
    %4 = vector.load %arg2[%c0_2, %c0_3, %c0_4] : memref<1x16x1024xf32, #tpu.memory_space<vmem>>, vector<1x16x1024xf32>
    %5 = vector.shape_cast %4 : vector<1x16x1024xf32> to vector<16x1024xf32>
    %6 = arith.truncf %5 : vector<16x1024xf32> to vector<16x1024xbf16>
    %cst = arith.constant dense<0.000000e+00> : vector<16x1024xf32>
    %7 = tpu.matmul %3, %6, %cst {dimension_numbers = #tpu.dot_dimension_numbers<[1], [0], [0], [1], [0, 0, 1, 1], [], []>} : vector<16x16xbf16>, vector<16x1024xbf16>, vector<16x1024xf32> -> vector<16x1024xf32>
    %8 = arith.truncf %7 : vector<16x1024xf32> to vector<16x1024xbf16>
    %c0_5 = arith.constant 0 : index
    %c0_6 = arith.constant 0 : index
    %c0_7 = arith.constant 0 : index
    %9 = vector.load %arg4[%c0_5, %c0_6, %c0_7] : memref<1x16x1024xbf16, #tpu.memory_space<vmem>>, vector<1x16x1024xbf16>
    %10 = vector.shape_cast %9 : vector<1x16x1024xbf16> to vector<16x1024xbf16>
    %11 = vector.shape_cast %8 : vector<16x1024xbf16> to vector<1x16x1024xbf16>
    tpu.vector_store %arg4[%c0_5, %c0_6, %c0_7], %11 {strides = array<i32>} : memref<1x16x1024xbf16, #tpu.memory_space<vmem>>, vector<1x16x1024xbf16>,
    %c0_8 = arith.constant 0 : index
    %c0_9 = arith.constant 0 : index
    %c0_10 = arith.constant 0 : index
    %12 = vector.load %arg5[%c0_8, %c0_9, %c0_10] : memref<1x16x1xf32, #tpu.memory_space<vmem>>, vector<1x16x1xf32>
    %13 = vector.shape_cast %12 : vector<1x16x1xf32> to vector<16x1xf32>
    %cst_11 = arith.constant dense<0.000000e+00> : vector<16xf32>
    %14 = vector.multi_reduction <add>, %7, %cst_11 [1] : vector<16x1024xf32> to vector<16xf32>
    %15 = vector.shape_cast %14 : vector<16xf32> to vector<16x1xf32>
    %16 = arith.addf %13, %15 : vector<16x1xf32>
    %c0_12 = arith.constant 0 : index
    %c0_13 = arith.constant 0 : index
    %c0_14 = arith.constant 0 : index
    %17 = vector.load %arg5[%c0_12, %c0_13, %c0_14] : memref<1x16x1xf32, #tpu.memory_space<vmem>>, vector<1x16x1xf32>
    %18 = vector.shape_cast %17 : vector<1x16x1xf32> to vector<16x1xf32>
    %19 = vector.shape_cast %16 : vector<16x1xf32> to vector<1x16x1xf32>
    tpu.vector_store %arg5[%c0_12, %c0_13, %c0_14], %19 {strides = array<i32>} : memref<1x16x1xf32, #tpu.memory_space<vmem>>, vector<1x16x1xf32>,
    %c0_15 = arith.constant 0 : index
    %c0_16 = arith.constant 0 : index
    %c0_17 = arith.constant 0 : index
    %20 = vector.load %arg6[%c0_15, %c0_16, %c0_17] : memref<1x16x1xf32, #tpu.memory_space<vmem>>, vector<1x16x1xf32>
    %21 = vector.shape_cast %20 : vector<1x16x1xf32> to vector<16x1xf32>
    %22 = arith.mulf %7, %7 : vector<16x1024xf32>
    %cst_18 = arith.constant dense<0.000000e+00> : vector<16xf32>
    %23 = vector.multi_reduction <add>, %22, %cst_18 [1] : vector<16x1024xf32> to vector<16xf32>
    %24 = vector.shape_cast %23 : vector<16xf32> to vector<16x1xf32>
    %25 = arith.addf %21, %24 : vector<16x1xf32>
    %c0_19 = arith.constant 0 : index
    %c0_20 = arith.constant 0 : index
    %c0_21 = arith.constant 0 : index
    %26 = vector.load %arg6[%c0_19, %c0_20, %c0_21] : memref<1x16x1xf32, #tpu.memory_space<vmem>>, vector<1x16x1xf32>
    %27 = vector.shape_cast %26 : vector<1x16x1xf32> to vector<16x1xf32>
    %28 = vector.shape_cast %25 : vector<16x1xf32> to vector<1x16x1xf32>
    tpu.vector_store %arg6[%c0_19, %c0_20, %c0_21], %28 {strides = array<i32>} : memref<1x16x1xf32, #tpu.memory_space<vmem>>, vector<1x16x1xf32>,
    return
  }
  func.func @transform_0(%arg0: i32, %arg1: i32) -> (i32, i32, i32) {
    %c0_i32 = arith.constant 0 : i32
    %c0_i32_0 = arith.constant 0 : i32
    return %arg0, %c0_i32, %arg1 : i32, i32, i32
  }
  func.func @transform_1(%arg0: i32, %arg1: i32) -> (i32, i32) {
    %c0_i32 = arith.constant 0 : i32
    %c0_i32_0 = arith.constant 0 : i32
    %c0_i32_1 = arith.constant 0 : i32
    return %c0_i32, %c0_i32_0 : i32, i32
  }
  func.func @transform_2(%arg0: i32, %arg1: i32) -> (i32, i32, i32) {
    %c0_i32 = arith.constant 0 : i32
    %c0_i32_0 = arith.constant 0 : i32
    return %arg0, %c0_i32, %arg1 : i32, i32, i32
  }
  func.func @transform_3(%arg0: i32, %arg1: i32) -> (i32, i32, i32) {
    %c0_i32 = arith.constant 0 : i32
    %c0_i32_0 = arith.constant 0 : i32
    %c0_i32_1 = arith.constant 0 : i32
    return %arg0, %c0_i32, %c0_i32_0 : i32, i32, i32
  }
  func.func @transform_4(%arg0: i32, %arg1: i32) -> (i32, i32, i32) {
    %c0_i32 = arith.constant 0 : i32
    %c0_i32_0 = arith.constant 0 : i32
    %c0_i32_1 = arith.constant 0 : i32
    return %arg0, %c0_i32, %c0_i32_0 : i32, i32, i32
  }
}

module attributes {stable_mosaic.version = 11 : i64} {
  func.func @_pass3_kernel(%arg0: i32, %arg1: i32, %arg2: memref<1x16x1024xbf16, #tpu.memory_space<vmem>>, %arg3: memref<1x16x1024xf32, #tpu.memory_space<vmem>>, %arg4: memref<16x2xf32, #tpu.memory_space<vmem>>, %arg5: memref<16x2xf32, #tpu.memory_space<vmem>>, %arg6: memref<16x16xbf16, #tpu.memory_space<vmem>>, %arg7: memref<1x16x1024xf32, #tpu.memory_space<vmem>>) attributes {dimension_semantics = [#tpu.dimension_semantics<parallel>, #tpu.dimension_semantics<parallel>], iteration_bounds = array<i64: 2, 1>, scalar_prefetch = 0 : i64, scratch_operands = 0 : i64, tpu.core_type = #tpu.core_type<tc>, window_params = [{transform_indices = @transform_0, window_bounds = array<i64: 1, 16, 1024>}, {transform_indices = @transform_1, window_bounds = array<i64: 1, 16, 1024>}, {pipeline_mode = #tpu.pipeline_mode<synchronous>, transform_indices = @transform_2, window_bounds = array<i64: 16, 2>}, {pipeline_mode = #tpu.pipeline_mode<synchronous>, transform_indices = @transform_3, window_bounds = array<i64: 16, 2>}, {pipeline_mode = #tpu.pipeline_mode<synchronous>, transform_indices = @transform_4, window_bounds = array<i64: 16, 16>}, {transform_indices = @transform_5, window_bounds = array<i64: 1, 16, 1024>}]} {
    %c0 = arith.constant 0 : index
    %c0_0 = arith.constant 0 : index
    %0 = vector.load %arg4[%c0, %c0_0] : memref<16x2xf32, #tpu.memory_space<vmem>>, vector<16x2xf32>
    %c0_1 = arith.constant 0 : index
    %c0_2 = arith.constant 0 : index
    %1 = vector.load %arg5[%c0_1, %c0_2] : memref<16x2xf32, #tpu.memory_space<vmem>>, vector<16x2xf32>
    %c0_3 = arith.constant 0 : index
    %c0_4 = arith.constant 0 : index
    %c0_5 = arith.constant 0 : index
    %2 = vector.load %arg2[%c0_3, %c0_4, %c0_5] : memref<1x16x1024xbf16, #tpu.memory_space<vmem>>, vector<1x16x1024xbf16>
    %3 = vector.shape_cast %2 : vector<1x16x1024xbf16> to vector<16x1024xbf16>
    %4 = arith.extf %3 : vector<16x1024xbf16> to vector<16x1024xf32>
    %5 = vector.extract_strided_slice %0 {offsets = [0, 0], sizes = [16, 1], strides = [1, 1]} : vector<16x2xf32> to vector<16x1xf32>
    %6 = vector.broadcast %5 : vector<16x1xf32> to vector<16x1024xf32>
    %7 = arith.mulf %4, %6 : vector<16x1024xf32>
    %8 = vector.extract_strided_slice %0 {offsets = [0, 1], sizes = [16, 1], strides = [1, 1]} : vector<16x2xf32> to vector<16x1xf32>
    %9 = vector.broadcast %8 : vector<16x1xf32> to vector<16x1024xf32>
    %10 = arith.addf %7, %9 : vector<16x1024xf32>
    %cst = arith.constant 0.000000e+00 : f32
    %11 = vector.broadcast %cst : f32 to vector<16x1024xf32>
    %12 = arith.cmpf oge, %10, %11 : vector<16x1024xf32>
    %cst_6 = arith.constant 0.00999999977 : f32
    %13 = vector.broadcast %cst_6 : f32 to vector<16x1024xf32>
    %14 = arith.mulf %13, %10 : vector<16x1024xf32>
    %15 = arith.select %12, %10, %14 : vector<16x1024xi1>, vector<16x1024xf32>
    %c0_7 = arith.constant 0 : index
    %c0_8 = arith.constant 0 : index
    %16 = vector.load %arg6[%c0_7, %c0_8] : memref<16x16xbf16, #tpu.memory_space<vmem>>, vector<16x16xbf16>
    %17 = arith.truncf %15 : vector<16x1024xf32> to vector<16x1024xbf16>
    %cst_9 = arith.constant dense<0.000000e+00> : vector<16x1024xf32>
    %18 = tpu.matmul %16, %17, %cst_9 {dimension_numbers = #tpu.dot_dimension_numbers<[1], [0], [0], [1], [0, 0, 1, 1], [], []>} : vector<16x16xbf16>, vector<16x1024xbf16>, vector<16x1024xf32> -> vector<16x1024xf32>
    %19 = vector.extract_strided_slice %1 {offsets = [0, 0], sizes = [16, 1], strides = [1, 1]} : vector<16x2xf32> to vector<16x1xf32>
    %20 = vector.broadcast %19 : vector<16x1xf32> to vector<16x1024xf32>
    %21 = arith.mulf %18, %20 : vector<16x1024xf32>
    %22 = vector.extract_strided_slice %1 {offsets = [0, 1], sizes = [16, 1], strides = [1, 1]} : vector<16x2xf32> to vector<16x1xf32>
    %23 = vector.broadcast %22 : vector<16x1xf32> to vector<16x1024xf32>
    %24 = arith.addf %21, %23 : vector<16x1024xf32>
    %c0_10 = arith.constant 0 : index
    %c0_11 = arith.constant 0 : index
    %c0_12 = arith.constant 0 : index
    %25 = vector.load %arg3[%c0_10, %c0_11, %c0_12] : memref<1x16x1024xf32, #tpu.memory_space<vmem>>, vector<1x16x1024xf32>
    %26 = vector.shape_cast %25 : vector<1x16x1024xf32> to vector<16x1024xf32>
    %27 = arith.addf %24, %26 : vector<16x1024xf32>
    %cst_13 = arith.constant 0.000000e+00 : f32
    %28 = vector.broadcast %cst_13 : f32 to vector<16x1024xf32>
    %29 = arith.cmpf oge, %27, %28 : vector<16x1024xf32>
    %cst_14 = arith.constant 0.00999999977 : f32
    %30 = vector.broadcast %cst_14 : f32 to vector<16x1024xf32>
    %31 = arith.mulf %30, %27 : vector<16x1024xf32>
    %32 = arith.select %29, %27, %31 : vector<16x1024xi1>, vector<16x1024xf32>
    %c0_15 = arith.constant 0 : index
    %c0_16 = arith.constant 0 : index
    %c0_17 = arith.constant 0 : index
    %33 = vector.load %arg7[%c0_15, %c0_16, %c0_17] : memref<1x16x1024xf32, #tpu.memory_space<vmem>>, vector<1x16x1024xf32>
    %34 = vector.shape_cast %33 : vector<1x16x1024xf32> to vector<16x1024xf32>
    %35 = vector.shape_cast %32 : vector<16x1024xf32> to vector<1x16x1024xf32>
    tpu.vector_store %arg7[%c0_15, %c0_16, %c0_17], %35 {strides = array<i32>} : memref<1x16x1024xf32, #tpu.memory_space<vmem>>, vector<1x16x1024xf32>,
    return
  }
  func.func @transform_0(%arg0: i32, %arg1: i32) -> (i32, i32, i32) {
    %c0_i32 = arith.constant 0 : i32
    %c0_i32_0 = arith.constant 0 : i32
    return %arg0, %c0_i32, %arg1 : i32, i32, i32
  }
  func.func @transform_1(%arg0: i32, %arg1: i32) -> (i32, i32, i32) {
    %c0_i32 = arith.constant 0 : i32
    %c0_i32_0 = arith.constant 0 : i32
    return %arg0, %c0_i32, %arg1 : i32, i32, i32
  }
  func.func @transform_2(%arg0: i32, %arg1: i32) -> (i32, i32) {
    %c0_i32 = arith.constant 0 : i32
    %c0_i32_0 = arith.constant 0 : i32
    %c0_i32_1 = arith.constant 0 : i32
    return %c0_i32, %c0_i32_0 : i32, i32
  }
  func.func @transform_3(%arg0: i32, %arg1: i32) -> (i32, i32) {
    %c0_i32 = arith.constant 0 : i32
    %c0_i32_0 = arith.constant 0 : i32
    %c0_i32_1 = arith.constant 0 : i32
    return %c0_i32, %c0_i32_0 : i32, i32
  }
  func.func @transform_4(%arg0: i32, %arg1: i32) -> (i32, i32) {
    %c0_i32 = arith.constant 0 : i32
    %c0_i32_0 = arith.constant 0 : i32
    %c0_i32_1 = arith.constant 0 : i32
    return %c0_i32, %c0_i32_0 : i32, i32
  }
  func.func @transform_5(%arg0: i32, %arg1: i32) -> (i32, i32, i32) {
    %c0_i32 = arith.constant 0 : i32
    %c0_i32_0 = arith.constant 0 : i32
    return %arg0, %c0_i32, %arg1 : i32, i32, i32
  }
}

module attributes {stable_mosaic.version = 11 : i64} {
  func.func @_pass2_kernel(%arg0: i32, %arg1: i32, %arg2: memref<1x16x1024xbf16, #tpu.memory_space<vmem>>, %arg3: memref<16x2xf32, #tpu.memory_space<vmem>>, %arg4: memref<16x16xbf16, #tpu.memory_space<vmem>>, %arg5: memref<1x16x1xf32, #tpu.memory_space<vmem>>, %arg6: memref<1x16x1xf32, #tpu.memory_space<vmem>>) attributes {dimension_semantics = [#tpu.dimension_semantics<parallel>, #tpu.dimension_semantics<arbitrary>], iteration_bounds = array<i64: 2, 1>, scalar_prefetch = 0 : i64, scratch_operands = 0 : i64, tpu.core_type = #tpu.core_type<tc>, window_params = [{transform_indices = @transform_0, window_bounds = array<i64: 1, 16, 1024>}, {pipeline_mode = #tpu.pipeline_mode<synchronous>, transform_indices = @transform_1, window_bounds = array<i64: 16, 2>}, {pipeline_mode = #tpu.pipeline_mode<synchronous>, transform_indices = @transform_2, window_bounds = array<i64: 16, 16>}, {transform_indices = @transform_3, window_bounds = array<i64: 1, 16, 1>}, {transform_indices = @transform_4, window_bounds = array<i64: 1, 16, 1>}]} {
    %c0_i32 = arith.constant 0 : i32
    %0 = arith.cmpi eq, %arg1, %c0_i32 : i32
    %1 = arith.extui %0 : i1 to i32
    %c0_i32_0 = arith.constant 0 : i32
    %2 = arith.cmpi ne, %1, %c0_i32_0 : i32
    scf.if %2 {
      %cst_23 = arith.constant 0.000000e+00 : f32
      %38 = vector.broadcast %cst_23 : f32 to vector<16x1xf32>
      %c0_24 = arith.constant 0 : index
      %c0_25 = arith.constant 0 : index
      %c0_26 = arith.constant 0 : index
      %39 = vector.load %arg5[%c0_24, %c0_25, %c0_26] : memref<1x16x1xf32, #tpu.memory_space<vmem>>, vector<1x16x1xf32>
      %40 = vector.shape_cast %39 : vector<1x16x1xf32> to vector<16x1xf32>
      %41 = vector.shape_cast %38 : vector<16x1xf32> to vector<1x16x1xf32>
      tpu.vector_store %arg5[%c0_24, %c0_25, %c0_26], %41 {strides = array<i32>} : memref<1x16x1xf32, #tpu.memory_space<vmem>>, vector<1x16x1xf32>,
      %cst_27 = arith.constant 0.000000e+00 : f32
      %42 = vector.broadcast %cst_27 : f32 to vector<16x1xf32>
      %c0_28 = arith.constant 0 : index
      %c0_29 = arith.constant 0 : index
      %c0_30 = arith.constant 0 : index
      %43 = vector.load %arg6[%c0_28, %c0_29, %c0_30] : memref<1x16x1xf32, #tpu.memory_space<vmem>>, vector<1x16x1xf32>
      %44 = vector.shape_cast %43 : vector<1x16x1xf32> to vector<16x1xf32>
      %45 = vector.shape_cast %42 : vector<16x1xf32> to vector<1x16x1xf32>
      tpu.vector_store %arg6[%c0_28, %c0_29, %c0_30], %45 {strides = array<i32>} : memref<1x16x1xf32, #tpu.memory_space<vmem>>, vector<1x16x1xf32>,
    } else {
    }
    %c0 = arith.constant 0 : index
    %c0_1 = arith.constant 0 : index
    %3 = vector.load %arg3[%c0, %c0_1] : memref<16x2xf32, #tpu.memory_space<vmem>>, vector<16x2xf32>
    %c0_2 = arith.constant 0 : index
    %c0_3 = arith.constant 0 : index
    %c0_4 = arith.constant 0 : index
    %4 = vector.load %arg2[%c0_2, %c0_3, %c0_4] : memref<1x16x1024xbf16, #tpu.memory_space<vmem>>, vector<1x16x1024xbf16>
    %5 = vector.shape_cast %4 : vector<1x16x1024xbf16> to vector<16x1024xbf16>
    %6 = arith.extf %5 : vector<16x1024xbf16> to vector<16x1024xf32>
    %7 = vector.extract_strided_slice %3 {offsets = [0, 0], sizes = [16, 1], strides = [1, 1]} : vector<16x2xf32> to vector<16x1xf32>
    %8 = vector.broadcast %7 : vector<16x1xf32> to vector<16x1024xf32>
    %9 = arith.mulf %6, %8 : vector<16x1024xf32>
    %10 = vector.extract_strided_slice %3 {offsets = [0, 1], sizes = [16, 1], strides = [1, 1]} : vector<16x2xf32> to vector<16x1xf32>
    %11 = vector.broadcast %10 : vector<16x1xf32> to vector<16x1024xf32>
    %12 = arith.addf %9, %11 : vector<16x1024xf32>
    %cst = arith.constant 0.000000e+00 : f32
    %13 = vector.broadcast %cst : f32 to vector<16x1024xf32>
    %14 = arith.cmpf oge, %12, %13 : vector<16x1024xf32>
    %cst_5 = arith.constant 0.00999999977 : f32
    %15 = vector.broadcast %cst_5 : f32 to vector<16x1024xf32>
    %16 = arith.mulf %15, %12 : vector<16x1024xf32>
    %17 = arith.select %14, %12, %16 : vector<16x1024xi1>, vector<16x1024xf32>
    %c0_6 = arith.constant 0 : index
    %c0_7 = arith.constant 0 : index
    %18 = vector.load %arg4[%c0_6, %c0_7] : memref<16x16xbf16, #tpu.memory_space<vmem>>, vector<16x16xbf16>
    %19 = arith.truncf %17 : vector<16x1024xf32> to vector<16x1024xbf16>
    %cst_8 = arith.constant dense<0.000000e+00> : vector<16x1024xf32>
    %20 = tpu.matmul %18, %19, %cst_8 {dimension_numbers = #tpu.dot_dimension_numbers<[1], [0], [0], [1], [0, 0, 1, 1], [], []>} : vector<16x16xbf16>, vector<16x1024xbf16>, vector<16x1024xf32> -> vector<16x1024xf32>
    %c0_9 = arith.constant 0 : index
    %c0_10 = arith.constant 0 : index
    %c0_11 = arith.constant 0 : index
    %21 = vector.load %arg5[%c0_9, %c0_10, %c0_11] : memref<1x16x1xf32, #tpu.memory_space<vmem>>, vector<1x16x1xf32>
    %22 = vector.shape_cast %21 : vector<1x16x1xf32> to vector<16x1xf32>
    %cst_12 = arith.constant dense<0.000000e+00> : vector<16xf32>
    %23 = vector.multi_reduction <add>, %20, %cst_12 [1] : vector<16x1024xf32> to vector<16xf32>
    %24 = vector.shape_cast %23 : vector<16xf32> to vector<16x1xf32>
    %25 = arith.addf %22, %24 : vector<16x1xf32>
    %c0_13 = arith.constant 0 : index
    %c0_14 = arith.constant 0 : index
    %c0_15 = arith.constant 0 : index
    %26 = vector.load %arg5[%c0_13, %c0_14, %c0_15] : memref<1x16x1xf32, #tpu.memory_space<vmem>>, vector<1x16x1xf32>
    %27 = vector.shape_cast %26 : vector<1x16x1xf32> to vector<16x1xf32>
    %28 = vector.shape_cast %25 : vector<16x1xf32> to vector<1x16x1xf32>
    tpu.vector_store %arg5[%c0_13, %c0_14, %c0_15], %28 {strides = array<i32>} : memref<1x16x1xf32, #tpu.memory_space<vmem>>, vector<1x16x1xf32>,
    %c0_16 = arith.constant 0 : index
    %c0_17 = arith.constant 0 : index
    %c0_18 = arith.constant 0 : index
    %29 = vector.load %arg6[%c0_16, %c0_17, %c0_18] : memref<1x16x1xf32, #tpu.memory_space<vmem>>, vector<1x16x1xf32>
    %30 = vector.shape_cast %29 : vector<1x16x1xf32> to vector<16x1xf32>
    %31 = arith.mulf %20, %20 : vector<16x1024xf32>
    %cst_19 = arith.constant dense<0.000000e+00> : vector<16xf32>
    %32 = vector.multi_reduction <add>, %31, %cst_19 [1] : vector<16x1024xf32> to vector<16xf32>
    %33 = vector.shape_cast %32 : vector<16xf32> to vector<16x1xf32>
    %34 = arith.addf %30, %33 : vector<16x1xf32>
    %c0_20 = arith.constant 0 : index
    %c0_21 = arith.constant 0 : index
    %c0_22 = arith.constant 0 : index
    %35 = vector.load %arg6[%c0_20, %c0_21, %c0_22] : memref<1x16x1xf32, #tpu.memory_space<vmem>>, vector<1x16x1xf32>
    %36 = vector.shape_cast %35 : vector<1x16x1xf32> to vector<16x1xf32>
    %37 = vector.shape_cast %34 : vector<16x1xf32> to vector<1x16x1xf32>
    tpu.vector_store %arg6[%c0_20, %c0_21, %c0_22], %37 {strides = array<i32>} : memref<1x16x1xf32, #tpu.memory_space<vmem>>, vector<1x16x1xf32>,
    return
  }
  func.func @transform_0(%arg0: i32, %arg1: i32) -> (i32, i32, i32) {
    %c0_i32 = arith.constant 0 : i32
    %c0_i32_0 = arith.constant 0 : i32
    return %arg0, %c0_i32, %arg1 : i32, i32, i32
  }
  func.func @transform_1(%arg0: i32, %arg1: i32) -> (i32, i32) {
    %c0_i32 = arith.constant 0 : i32
    %c0_i32_0 = arith.constant 0 : i32
    %c0_i32_1 = arith.constant 0 : i32
    return %c0_i32, %c0_i32_0 : i32, i32
  }
  func.func @transform_2(%arg0: i32, %arg1: i32) -> (i32, i32) {
    %c0_i32 = arith.constant 0 : i32
    %c0_i32_0 = arith.constant 0 : i32
    %c0_i32_1 = arith.constant 0 : i32
    return %c0_i32, %c0_i32_0 : i32, i32
  }
  func.func @transform_3(%arg0: i32, %arg1: i32) -> (i32, i32, i32) {
    %c0_i32 = arith.constant 0 : i32
    %c0_i32_0 = arith.constant 0 : i32
    %c0_i32_1 = arith.constant 0 : i32
    return %arg0, %c0_i32, %c0_i32_0 : i32, i32, i32
  }
  func.func @transform_4(%arg0: i32, %arg1: i32) -> (i32, i32, i32) {
    %c0_i32 = arith.constant 0 : i32
    %c0_i32_0 = arith.constant 0 : i32
    %c0_i32_1 = arith.constant 0 : i32
    return %arg0, %c0_i32, %c0_i32_0 : i32, i32, i32
  }
}

</mosaic_0001>

<bundles_post_ra>
// kernel: resnet_basic_block.3
= control target key start
LH: loop header
LB: loop body
LE: loop exit
PB: predicated region body
PF: predicated region fallthrough
CT: control target
= control target key end

     0   :  { %10 = vsyncpa [#allocation3], 0  ;;  %s1147_s0 = inlined_call_operand.hbm [shape: f32[2,16,1024], index: 0, kind: input, shape index: {}]   ;;  %s1148_s1 = inlined_call_operand.vmem [shape: bf16[16,16], index: 1, kind: input, shape index: {}]   ;;  %s1149_s2 = inlined_call_operand.vmem [shape: bf16[2,16,1024], index: 2, kind: output, shape index: {0}]   ;;  %s1150_s3 = inlined_call_operand.vmem [shape: f32[2,16,1], index: 3, kind: output, shape index: {1}]   ;;  %s1151_s4 = inlined_call_operand.vmem [shape: f32[2,16,1], index: 4, kind: output, shape index: {2}]  }
   0x1   :  { %12 = vsyncpa [#allocation3 + $0x1], 0  ;;  %s982_s15 = smov 0   ;;  %s984_s16 = smov 0  }
   0x2   :  { %s986_s17 = smov 0   ;;  %s988_s18 = smov 0  }
   0x3   :  { %s990_s19 = smov 0   ;;  %s992_s20 = smov 0  }
   0x4 LB: > { %s770_s21 = sadd.s32 4294967295, %s950_s20   ;;  %s30_s22 = sadd.s32 1, %s946_s19  ;;  %s950_s20 = sphi %s992_s20, %s18_s20   ;;  %s946_s19 = sphi %s990_s19, %s1159_s19   ;;  %s942_s18 = sphi %s988_s18, %s1158_s18   ;;  %s938_s17 = sphi %s986_s17, %s1157_s17   ;;  %s934_s16 = sphi %s984_s16, %s1156_s16   ;;  %s930_s15 = sphi %s982_s15, %s1155_s15  }
   0x5   : > { %p32_p0 = scmp.ge.s32.totalorder %s30_s22, 2  ;;  %s39_s23 = sadd.s32 1, %s938_s17 }
   0x6   : > { %p46_p1 = scmp.ne.s32.totalorder %s938_s17, %s934_s16  ;;  %p47_p2 = scmp.eq.s32.totalorder %s950_s20, 0 }
   0x7   : > { %s1161_s22 = smov (%p32_p0, %s30_s22), 0  ;;  %p52_p4 = scmp.ne.s32.totalorder %s934_s16, %s930_s15 }
   0x8   : > { %p1018_p3 = por %p47_p2, %p46_p1  ;;  %s34_s25 = ssub.s32 %s946_s19, %s1161_s22 }
   0x9   : > { %p53_p5 = scmp.eq.s32.totalorder %s770_s21, 0  ;;  %p37_p6 = scmp.eq.s32.totalorder %s34_s25, 0 }
   0xa   : > { %p818_p8 = scmp.lt.s32.totalorder %s950_s20, 2  ;;  %s180_s28 = sand.u32 1, %s938_s17  }
   0xb   : > { %p1025_p7 = por %p53_p5, %p52_p4  ;;  %s800_s29 = sshll.u32 %s946_s19, 11 }
   0xc   : > { %s1031_s27 = scalar_select %p37_p6, %s938_s17, %s39_s23  }
   0xd   : > { %s774_s30 = sshll.u32 %s180_s28, 7  ;;  %s192_s7 = scalar_lea.hbm %s1147_s0, %s800_s29 }
   0xe   : > { %s184_s8 = scalar_lea.vmem [#allocation2], %s774_s30  ;;  %p1040_p9 = pnand %p818_p8, %p1018_p3 }
   0xf   : > { %s193_s9 = sshll.u32 %s184_s8, 4  ;;  %s181_s11 = scalar_lea.sflag [#allocation3], %s180_s28  ;;  %s194_s9 = int_to_ptr.vmem [resolvable:$true] %s193_s9 }
  0x10   : > { %p874_p10 = pneg %p1040_p9  ;;  %s885_s12 = scalar_lea.vmem %s194_s9, 2048 }
  0x11   : > { %p886_p11 = scmp.ne.s32.totalorder %s194_s9, %s885_s12  ;;  %s952_s13 = smov [#allocation2]  }
  0x12   : > { %s890_s14 = sshll.u32 %s952_s13, 4  ;;  %s891_s14 = int_to_ptr.vmem [resolvable:$false] %s890_s14 }
  0x13   : > { %p888_p12 = pnand %p886_p11, %p874_p10  ;;  %s892_s15 = scalar_lea.vmem %s891_s14, 4096 }
  0x14   : > { %p893_p0 = scmp.lt.s32.totalorder %s194_s9, %s891_s14  ;;  %p894_p1 = scmp.lt.s32.totalorder %s892_s15, %s885_s12 }
  0x15   : > { %p889_p13 = pneg %p888_p12 }
  0x16   : > { %p895_p2 = por %p894_p1, %p893_p0 }
  0x18   : > { %p896_p3 = pnand %p895_p2, %p889_p13 }
  0x1a   : > { %899 = shalt.err (!%p896_p3)
}
  0x1b   : > { %s953_s21 = smov 1024   ;;  %s954_s23 = smov 64  }
  0x1c   : > { %817 = dma.hbm_to_vmem [thread:$0]  (!%p1040_p9), %s192_s7, 2048, %s194_s9, %s181_s11, %s953_s21, %s953_s21, %s954_s23  }
  0x1d   : > { %p777_p4 = scmp.ge.s32.totalorder %s950_s20, 1  ;;  %p201_p5 = scmp.lt.s32.totalorder %s950_s20, 3 }
  0x1f   : > { %p202_p6 = pnand %p777_p4, %p201_p5 }
  0x20   : > { %s207_s24 = sand.u32 (!%p202_p6), 1, %s934_s16  }
  0x21   : > { %205 = sbr.rel (%p202_p6) target bundleno = 404 (0x194), region = 28  ;;  %s778_s25 = sshll.u32 (!%p202_p6), %s207_s24, 7 }
  0x22   : > { %s208_s28 = scalar_lea.sflag (!%p202_p6), [#allocation3], %s207_s24  ;;  %s1051_s29 = scalar_lea.vmem (!%p202_p6), [#allocation2], %s778_s25 }
  0x26   : > { %925 = dma.done.wait (%p1025_p7), %s208_s28, 2048  }
  0x27   : > { %927 = vsyncadd (%p1025_p7), %s208_s28, 4294965248  ;;  %v955_v0 = vmov 0   ;;  %v284_v1 = vld [vmem:[%s1051_s29 + $0x8] sm:$0xff]  ;;  %v286_v3 = vld [vmem:[%s1051_s29 + $0x18] sm:$0xff]  ;;  %vm312_vm0 = vcmask 130048   ;;  %p252_p7 = scmp.lt.s32.totalorder %s942_s18, 1 }
  0x28   : > { %348 = vmatprep.mubr.bf16.mxu0 %v955_v0  ;;  %391 = vmatprep.mubr.bf16.mxu1 %v955_v0  ;;  %v292_v2 = vld [vmem:[%s1051_s29 + $0x48] sm:$0xff]  ;;  %v294_v5 = vld [vmem:[%s1051_s29 + $0x58] sm:$0xff]  ;;  %v283_v6 = vld [vmem:[%s1051_s29] sm:$0xff]  ;;  %vm276_vm1 = vcmask 7168   ;;  %v956_v26 = vmov 0.0  }
  0x29   : > { %v300_v4 = vpack.c.bf16 %v292_v2, %v284_v1  ;;  %v291_v7 = vld [vmem:[%s1051_s29 + $0x40] sm:$0xff]  ;;  %v302_v8 = vpack.c.bf16 %v294_v5, %v286_v3  ;;  %v285_v10 = vld [vmem:[%s1051_s29 + $0x10] sm:$0xff]  ;;  %v288_v14 = vld [vmem:[%s1051_s29 + $0x28] sm:$0xff]  ;;  %s1163_s18 = smov (!%p252_p7, %s942_s18), 1 }
  0x2a   : > { %v299_v9 = vpack.c.bf16 %v291_v7, %v283_v6  ;;  %v293_v11 = vld [vmem:[%s1051_s29 + $0x50] sm:$0xff]  ;;  %v871_v13 = vld [vmem:[%s1148_s1] sm:$0xff]   ;;  %v296_v15 = vld [vmem:[%s1051_s29 + $0x68] sm:$0xff]  ;;  %s802_s5 = sshll.u32 %s1163_s18, 4  ;;  %s801_s9 = sshll.u32 %s1163_s18, 6 }
  0x2b   : > { %330 = vmatprep.subr.bf16.mxu0 %v300_v4  ;;  %v301_v12 = vpack.c.bf16 %v293_v11, %v285_v10  ;;  %373 = vmatprep.subr.bf16.mxu1 %v302_v8  ;;  %v287_v16 = vld [vmem:[%s1051_s29 + $0x20] sm:$0xff]  ;;  %v304_v18 = vpack.c.bf16 %v296_v15, %v288_v14  ;;  %v290_v20 = vld [vmem:[%s1051_s29 + $0x38] sm:$0xff]  ;;  %v289_v22 = vld [vmem:[%s1051_s29 + $0x30] sm:$0xff]  ;;  %s1090_s8 = scalar_lea.vmem %s1150_s3, %s802_s5  ;;  %s1102_s12 = scalar_lea.vmem %s1149_s2, %s801_s9 }
  0x2c   : > { %331 = vmatpush1.bf16.msra.mxu0 %v299_v9  ;;  %v295_v17 = vld [vmem:[%s1051_s29 + $0x60] sm:$0xff]  ;;  %v298_v21 = vld [vmem:[%s1051_s29 + $0x78] sm:$0xff]  ;;  %v297_v24 = vld [vmem:[%s1051_s29 + $0x70] sm:$0xff]  ;;  %277 = vst.msk [vmem:[%s1090_s8] sm:$0xff] %vm276_vm1, %v956_v26  ;;  %s270_s15 = scalar_lea.vmem %s1151_s4, %s802_s5 }
  0x2d   : > { %374 = vmatpush1.bf16.msra.mxu1 %v301_v12  ;;  %v303_v19 = vpack.c.bf16 %v295_v17, %v287_v16  ;;  %v306_v23 = vpack.c.bf16 %v298_v21, %v290_v20  ;;  %416 = vmatprep.subr.bf16.mxu0 %v304_v18  ;;  %v305_v25 = vpack.c.bf16 %v297_v24, %v289_v22 }
  0x2e   : > { %278 = vst.msk [vmem:[%s1090_s8 + $0x8] sm:$0xff] %vm276_vm1, %v956_v26  ;;  %279 = vst.msk [vmem:[%s270_s15] sm:$0xff] %vm276_vm1, %v956_v26 }
  0x2f   : > { %786 = vmatmul.mubr.msk.bf16.vlgmr.msra.gmra.mxu0 %vm312_vm0, %v871_v13  ;;  %459 = vmatprep.subr.bf16.mxu1 %v306_v23  ;;  %280 = vst.msk [vmem:[%s270_s15 + $0x8] sm:$0xff] %vm276_vm1, %v956_v26 }
  0x30   : > { %787 = vmatmul.mubr.msk.bf16.vlgmr.msra.gmra.mxu1 %vm312_vm0, %v871_v13  ;;  %417 = vmatpush1.bf16.msra.mxu0 %v303_v19 }
  0x31   : > { %434 = vmatprep.mubr.bf16.mxu0 %v955_v0  ;;  %460 = vmatpush1.bf16.msra.mxu1 %v305_v25 }
  0x32   : > { %477 = vmatprep.mubr.bf16.mxu1 %v955_v0 }
  0x37   : > { %788 = vmatmul.mubr.msk.bf16.vlgmr.msra.gmra.mxu0 %vm312_vm0, %v871_v13 }
  0x38   : > { %789 = vmatmul.mubr.msk.bf16.vlgmr.msra.gmra.mxu1 %vm312_vm0, %v871_v13 }
  0xef   : > { %v350_v27 = vpop.f32.mrf.mxu0 }
  0xf0   : > { %v393_v28 = vpop.f32.mrf.mxu1  ;;  %v571_v29 = vmul.f32 %v350_v27, %v350_v27 }
  0xf1   : > { %v352_v30 = vpop.f32.mrf.mxu0  ;;  %v573_v31 = vmul.f32 %v393_v28, %v393_v28 }
  0xf2   : > { %v804_v32 = vpack.c.bf16 %v352_v30, %v350_v27  ;;  %v546_v33 = vadd.f32 %v352_v30, %v350_v27  ;;  %v572_v34 = vmul.f32 %v352_v30, %v352_v30  ;;  %v395_v35 = vpop.f32.mrf.mxu1 }
  0xf3   : > { %v805_v36 = vpack.c.bf16 %v395_v35, %v393_v28  ;;  %v354_v37 = vpop.f32.mrf.mxu0  ;;  %v574_v41 = vmul.f32 %v395_v35, %v395_v35 }
  0xf4   : > { %536 = vst [vmem:[%s1102_s12] sm:$0xff] %v804_v32  ;;  %v587_v38 = vadd.f32 %v572_v34, %v571_v29  ;;  %v547_v39 = vadd.f32 %v546_v33, %v393_v28  ;;  %v397_v40 = vpop.f32.mrf.mxu1  ;;  %v579_v48 = vmul.f32 %v354_v37, %v354_v37  ;;  %v544_v32 = vld [vmem:[%s1090_s8] sm:$0xff] }
  0xf5   : > { %537 = vst [vmem:[%s1102_s12 + $0x8] sm:$0xff] %v805_v36  ;;  %v356_v42 = vpop.f32.mrf.mxu0  ;;  %v581_v57 = vmul.f32 %v397_v40, %v397_v40  ;;  %v545_v36 = vld [vmem:[%s1090_s8 + $0x8] sm:$0xff] }
  0xf6   : > { %v548_v43 = vadd.f32 %v547_v39, %v395_v35  ;;  %v588_v44 = vadd.f32 %v587_v38, %v573_v31  ;;  %v808_v45 = vpack.c.bf16 %v356_v42, %v354_v37  ;;  %v555_v46 = vadd.f32 %v356_v42, %v354_v37  ;;  %v399_v47 = vpop.f32.mrf.mxu1  ;;  %v569_v35 = vld [vmem:[%s270_s15] sm:$0xff] }
  0xf7   : > { %v580_v49 = vmul.f32 %v356_v42, %v356_v42  ;;  %v809_v50 = vpack.c.bf16 %v399_v47, %v397_v40  ;;  %v436_v51 = vpop.f32.mrf.mxu0  ;;  %v582_v59 = vmul.f32 %v399_v47, %v399_v47 }
  0xf8   : > { %v589_v52 = vadd.f32 %v588_v44, %v574_v41  ;;  %540 = vst [vmem:[%s1102_s12 + $0x20] sm:$0xff] %v808_v45  ;;  %v556_v53 = vadd.f32 %v555_v46, %v397_v40  ;;  %v549_v54 = vadd.f32 %v548_v43, %v436_v51  ;;  %v575_v55 = vmul.f32 %v436_v51, %v436_v51  ;;  %v479_v56 = vpop.f32.mrf.mxu1  ;;  %v570_v41 = vld [vmem:[%s270_s15 + $0x8] sm:$0xff] }
  0xf9   : > { %v596_v58 = vadd.f32 %v580_v49, %v579_v48  ;;  %541 = vst [vmem:[%s1102_s12 + $0x28] sm:$0xff] %v809_v50  ;;  %v438_v60 = vpop.f32.mrf.mxu0  ;;  %v577_v3 = vmul.f32 %v479_v56, %v479_v56 }
  0xfa   : > { %v557_v61 = vadd.f32 %v556_v53, %v399_v47  ;;  %v590_v62 = vadd.f32 %v589_v52, %v575_v55  ;;  %v806_v63 = vpack.c.bf16 %v438_v60, %v436_v51  ;;  %v550_v0 = vadd.f32 %v549_v54, %v438_v60  ;;  %v481_v1 = vpop.f32.mrf.mxu1 }
  0xfb   : > { %v597_v2 = vadd.f32 %v596_v58, %v581_v57  ;;  %v576_v4 = vmul.f32 %v438_v60, %v438_v60  ;;  %v807_v5 = vpack.c.bf16 %v481_v1, %v479_v56  ;;  %v440_v6 = vpop.f32.mrf.mxu0  ;;  %v578_v21 = vmul.f32 %v481_v1, %v481_v1 }
  0xfc   : > { %538 = vst [vmem:[%s1102_s12 + $0x10] sm:$0xff] %v806_v63  ;;  %v558_v7 = vadd.f32 %v557_v61, %v440_v6  ;;  %v583_v8 = vmul.f32 %v440_v6, %v440_v6  ;;  %v483_v9 = vpop.f32.mrf.mxu1  ;;  %v551_v10 = vadd.f32 %v550_v0, %v479_v56 }
  0xfd   : > { %v598_v11 = vadd.f32 %v597_v2, %v582_v59  ;;  %539 = vst [vmem:[%s1102_s12 + $0x18] sm:$0xff] %v807_v5  ;;  %v442_v12 = vpop.f32.mrf.mxu0  ;;  %v591_v13 = vadd.f32 %v590_v62, %v576_v4  ;;  %v585_v24 = vmul.f32 %v483_v9, %v483_v9 }
  0xfe   : > { %v810_v14 = vpack.c.bf16 %v442_v12, %v440_v6  ;;  %v559_v15 = vadd.f32 %v558_v7, %v442_v12  ;;  %v584_v16 = vmul.f32 %v442_v12, %v442_v12  ;;  %v485_v17 = vpop.f32.mrf.mxu1  ;;  %v552_v18 = vadd.f32 %v551_v10, %v481_v1 }
  0xff   : > { %v599_v19 = vadd.f32 %v598_v11, %v583_v8  ;;  %v811_v20 = vpack.c.bf16 %v485_v17, %v483_v9  ;;  %v592_v22 = vadd.f32 %v591_v13, %v577_v3  ;;  %v586_v29 = vmul.f32 %v485_v17, %v485_v17 }
 0x100   : > { %542 = vst [vmem:[%s1102_s12 + $0x30] sm:$0xff] %v810_v14  ;;  %553 = vadd.xlane.f32.xlu0 %v552_v18  ;;  %v560_v23 = vadd.f32 %v559_v15, %v483_v9 }
 0x101   : > { %v600_v25 = vadd.f32 %v599_v19, %v584_v16  ;;  %543 = vst [vmem:[%s1102_s12 + $0x38] sm:$0xff] %v811_v20  ;;  %v593_v27 = vadd.f32 %v592_v22, %v578_v21 }
 0x102   : > { %v561_v28 = vadd.f32 %v560_v23, %v485_v17 }
 0x103   : > { %594 = vadd.xlane.f32.xlu1 %v593_v27  ;;  %v601_v30 = vadd.f32 %v600_v25, %v585_v24 }
 0x104   : > { %562 = vadd.xlane.f32.xlu0 %v561_v28 }
 0x105   : > { %v602_v31 = vadd.f32 %v601_v30, %v586_v29 }
 0x107   : > { %603 = vadd.xlane.f32.xlu1 %v602_v31 }
 0x189   : > { %v554_v33 = vpop.xlane.xlu0 %553 }
 0x18a   : > { %v564_v34 = vadd.f32 %v554_v33, %v544_v32 }
 0x18c   : > { %567 = vst.msk [vmem:[%s1090_s8] sm:$0xff] %vm276_vm1, %v564_v34  ;;  %v595_v37 = vpop.xlane.xlu1 %594 }
 0x18d   : > { %v605_v38 = vadd.f32 %v595_v37, %v569_v35  ;;  %v563_v39 = vpop.xlane.xlu0 %562 }
 0x18e   : > { %v565_v40 = vadd.f32 %v563_v39, %v545_v36 }
 0x18f   : > { %607 = vst.msk [vmem:[%s270_s15] sm:$0xff] %vm276_vm1, %v605_v38 }
 0x190   : > { %568 = vst.msk [vmem:[%s1090_s8 + $0x8] sm:$0xff] %vm276_vm1, %v565_v40  ;;  %v604_v42 = vpop.xlane.xlu1 %603 }
 0x191   : > { %v606_v43 = vadd.f32 %v604_v42, %v570_v41 }
 0x193   : > { %608 = vst.msk [vmem:[%s270_s15 + $0x8] sm:$0xff] %vm276_vm1, %v606_v43 }
 0x194 PF: > { %s18_s20 = sadd.s32 1, %s950_s20   ;;  %s1155_s15 = smov %s934_s16 }
 0x195   : > { %p15_p8 = scmp.ge.s32.totalorder %s18_s20, 4   ;;  %s1156_s16 = smov %s938_s17 }
 0x196   : > { %s1157_s17 = smov %s1031_s27  ;;  %s1158_s18 = smov %s946_s19 }
 0x197   : > { %s1159_s19 = smov %s1161_s22  ;;  %17 = sbr.rel (!%p15_p8) target bundleno = 4 (0x4), region = 96 }
 0x19c   :  { %671 = vsyncpa [#allocation3], 1 }
 0x19d   :  { %673 = vsyncpa [#allocation3 + $0x1], 1 }

// kernel: resnet_basic_block.4
= control target key start
LH: loop header
LB: loop body
LE: loop exit
PB: predicated region body
PF: predicated region fallthrough
CT: control target
= control target key end

     0   :  { %s835_s15 = smov 0   ;;  %s837_s16 = smov 0   ;;  %s966_s0 = inlined_call_operand.vmem [shape: bf16[2,16,1024], index: 0, kind: input, shape index: {}]   ;;  %s967_s1 = inlined_call_operand.vmem [shape: f32[16,2], index: 1, kind: input, shape index: {}]   ;;  %s968_s2 = inlined_call_operand.vmem [shape: bf16[16,16], index: 2, kind: input, shape index: {}]   ;;  %s969_s3 = inlined_call_operand.vmem [shape: f32[2,16,1], index: 3, kind: output, shape index: {0}]   ;;  %s970_s4 = inlined_call_operand.vmem [shape: f32[2,16,1], index: 4, kind: output, shape index: {1}]  }
   0x1   :  { %s839_s17 = smov 0  }
   0x2 LB: > { %s27_s18 = sadd.s32 1, %s801_s16  ;;  %p735_p0 = scmp.ge.s32.totalorder %s805_s17, 1  ;;  %s805_s17 = sphi %s839_s17, %s15_s17   ;;  %s801_s16 = sphi %s837_s16, %s972_s16   ;;  %s797_s15 = sphi %s835_s15, %s971_s15  }
   0x3   : > { %p29_p1 = scmp.ge.s32.totalorder %s27_s18, 2  ;;  %p184_p2 = scmp.lt.s32.totalorder %s805_s17, 3 }
   0x5   : > { %s974_s18 = smov (%p29_p1, %s27_s18), 0  ;;  %p185_p3 = pnand %p735_p0, %p184_p2 }
   0x6   : > { %p220_p4 = scmp.lt.s32.totalorder (!%p185_p3), %s797_s15, 1 }
   0x7   : > { %188 = sbr.rel (%p185_p3) target bundleno = 514 (0x202), region = 32 }
   0xc   : > { %v249_v0 = vld [vmem:[%s967_s1] sm:$0xff]  ;;  %v807_v1 = vmov 1   ;;  %v808_v2 = vmov 0   ;;  %v250_v3 = vld [vmem:[%s967_s1 + $0x8] sm:$0xff]  ;;  %s976_s15 = smov (!%p220_p4, %s797_s15), 1  ;;  %vm388_vm3 = vcmask 130048  }
   0xd   : > { %780 = vset.pattern.permute.xlu1 %v807_v1  ;;  %779 = vset.pattern.permute.xlu0 %v808_v2  ;;  %s749_s23 = sshll.u32 %s976_s15, 6  ;;  %s750_s29 = sshll.u32 %s976_s15, 4 }
   0xe   : > { %302 = vperm.xlu1 %780, %v249_v0   ;;  %277 = vperm.xlu0 %779, %v249_v0   ;;  %s227_s26 = scalar_lea.vmem %s966_s0, %s749_s23  ;;  %s932_s6 = scalar_lea.vmem %s969_s3, %s750_s29 }
   0xf   : > { %424 = vmatprep.mubr.bf16.mxu0 %v808_v2  ;;  %467 = vmatprep.mubr.bf16.mxu1 %v808_v2  ;;  %v251_v4 = vld [vmem:[%s227_s26] sm:$0xff]  ;;  %v252_v5 = vld [vmem:[%s227_s26 + $0x8] sm:$0xff]  ;;  %v253_v6 = vld [vmem:[%s227_s26 + $0x10] sm:$0xff]  ;;  %s238_s9 = scalar_lea.vmem %s970_s4, %s750_s29 }
  0x10   : > { %v254_v7 = vld [vmem:[%s227_s26 + $0x18] sm:$0xff]  ;;  %v255_v8 = vld [vmem:[%s227_s26 + $0x20] sm:$0xff]  ;;  %v256_v9 = vld [vmem:[%s227_s26 + $0x28] sm:$0xff]  ;;  %v260_v10 = vunpack.c.h.bf16 %v251_v4  ;;  %v262_v11 = vunpack.c.h.bf16 %v252_v5  ;;  %v259_v12 = vunpack.c.l.bf16 %v251_v4  ;;  %v261_v13 = vunpack.c.l.bf16 %v252_v5 }
  0x11   : > { %v868_v14 = vld [vmem:[%s227_s26 + $0x30] sm:$0xff]  ;;  %v264_v15 = vunpack.c.h.bf16 %v253_v6  ;;  %v266_v16 = vunpack.c.h.bf16 %v254_v7  ;;  %v268_v17 = vunpack.c.h.bf16 %v255_v8  ;;  %v270_v18 = vunpack.c.h.bf16 %v256_v9  ;;  %v870_v21 = vld [vmem:[%s227_s26 + $0x38] sm:$0xff] }
  0x12   : > { %306 = vperm.xlu1 %780, %v250_v3   ;;  %282 = vperm.xlu0 %779, %v250_v3   ;;  %v267_v19 = vunpack.c.l.bf16 %v255_v8  ;;  %v263_v20 = vunpack.c.l.bf16 %v253_v6  ;;  %v269_v24 = vunpack.c.l.bf16 %v256_v9  ;;  %v271_v25 = vunpack.c.l.bf16 %v868_v14 }
  0x13   : > { %v272_v26 = vunpack.c.h.bf16 %v868_v14  ;;  %v265_v27 = vunpack.c.l.bf16 %v254_v7  ;;  %v273_v33 = vunpack.c.l.bf16 %v870_v21  ;;  %v274_v34 = vunpack.c.h.bf16 %v870_v21 }
  0x16   : > { %781 = vset.pattern.permute.xlu0 %v807_v1 }
  0x89   : > { %v872_v22 = vpop.permute.xlu1 %302  ;;  %v278_v23 = vpop.permute.xlu0 %277 }
  0x8a   : > { %v286_v28 = vmul.f32 %v278_v23, %v260_v10  ;;  %v288_v29 = vmul.f32 %v278_v23, %v262_v11  ;;  %v285_v30 = vmul.f32 %v278_v23, %v259_v12  ;;  %v287_v31 = vmul.f32 %v278_v23, %v261_v13  ;;  %v782_v13 = vld [vmem:[%s968_s2] sm:$0xff]  }
  0x8b   : > { %v290_v32 = vmul.f32 %v278_v23, %v264_v15  ;;  %v292_v35 = vmul.f32 %v278_v23, %v266_v16  ;;  %v289_v39 = vmul.f32 %v278_v23, %v263_v20  ;;  %v291_v44 = vmul.f32 %v278_v23, %v265_v27 }
  0x8c   : > { %v310_v36 = vadd.f32 %v872_v22, %v286_v28  ;;  %v312_v37 = vadd.f32 %v872_v22, %v288_v29  ;;  %v309_v38 = vadd.f32 %v872_v22, %v285_v30  ;;  %v311_v41 = vadd.f32 %v872_v22, %v287_v31 }
  0x8d   : > { %v881_v40 = vpop.permute.xlu0 %282  ;;  %v314_v42 = vadd.f32 %v872_v22, %v290_v32  ;;  %v886_v43 = vadd.f32 %v872_v22, %v292_v35  ;;  %v890_v48 = vpop.permute.xlu1 %306  ;;  %v313_v10 = vadd.f32 %v872_v22, %v289_v39  ;;  %v315_v15 = vadd.f32 %v872_v22, %v291_v44 }
  0x8e   : > { %v294_v45 = vmul.f32 %v881_v40, %v268_v17  ;;  %vm326_vm0 = vcmp.ge.f32.partialorder %v310_v36, 0.0  ;;  %v342_v46 = vmul.f32 0.01, %v310_v36  ;;  %v296_v47 = vmul.f32 %v881_v40, %v270_v18 }
  0x8f   : > { %vm328_vm1 = vcmp.ge.f32.partialorder %v312_v37, 0.0  ;;  %v344_v49 = vmul.f32 0.01, %v312_v37  ;;  %v293_v50 = vmul.f32 %v881_v40, %v267_v19  ;;  %vm325_vm2 = vcmp.ge.f32.partialorder %v309_v38, 0.0 }
  0x90   : > { %v318_v51 = vadd.f32 %v890_v48, %v294_v45  ;;  %v358_v52 = vsel %vm326_vm0, %v310_v36, %v342_v46  ;;  %v320_v53 = vadd.f32 %v890_v48, %v296_v47  ;;  %v341_v54 = vmul.f32 0.01, %v309_v38 }
  0x91   : > { %v360_v55 = vsel %vm328_vm1, %v312_v37, %v344_v49  ;;  %v317_v56 = vadd.f32 %v890_v48, %v293_v50  ;;  %v295_v57 = vmul.f32 %v881_v40, %v269_v24  ;;  %vm327_vm4 = vcmp.ge.f32.partialorder %v311_v41, 0.0 }
  0x92   : > { %vm334_vm5 = vcmp.ge.f32.partialorder %v318_v51, 0.0  ;;  %v350_v58 = vmul.f32 0.01, %v318_v51  ;;  %vm336_vm6 = vcmp.ge.f32.partialorder %v320_v53, 0.0  ;;  %v352_v59 = vmul.f32 0.01, %v320_v53 }
  0x93   : > { %vm333_vm7 = vcmp.ge.f32.partialorder %v317_v56, 0.0  ;;  %v349_v60 = vmul.f32 0.01, %v317_v56  ;;  %v357_v61 = vsel %vm325_vm2, %v309_v38, %v341_v54  ;;  %v319_v62 = vadd.f32 %v890_v48, %v295_v57 }
  0x94   : > { %v366_v63 = vsel %vm334_vm5, %v318_v51, %v350_v58  ;;  %v368_v0 = vsel %vm336_vm6, %v320_v53, %v352_v59  ;;  %v343_v1 = vmul.f32 0.01, %v311_v41  ;;  %v298_v3 = vmul.f32 %v881_v40, %v272_v26 }
  0x95   : > { %v376_v4 = vpack.c.bf16 %v366_v63, %v358_v52  ;;  %v378_v5 = vpack.c.bf16 %v368_v0, %v360_v55  ;;  %v365_v6 = vsel %vm333_vm7, %v317_v56, %v349_v60  ;;  %vm335_vm8 = vcmp.ge.f32.partialorder %v319_v62, 0.0 }
  0x96   : > { %v375_v7 = vpack.c.bf16 %v365_v6, %v357_v61  ;;  %v351_v8 = vmul.f32 0.01, %v319_v62  ;;  %v322_v9 = vadd.f32 %v890_v48, %v298_v3  ;;  %vm330_vm9 = vcmp.ge.f32.partialorder %v314_v42, 0.0 }
  0x97   : > { %406 = vmatprep.subr.bf16.mxu0 %v376_v4  ;;  %449 = vmatprep.subr.bf16.mxu1 %v378_v5  ;;  %v346_v11 = vmul.f32 0.01, %v314_v42  ;;  %v300_v12 = vmul.f32 %v881_v40, %v274_v34  ;;  %v359_v16 = vsel %vm327_vm4, %v311_v41, %v343_v1  ;;  %v348_v23 = vmul.f32 0.01, %v886_v43 }
  0x98   : > { %407 = vmatpush1.bf16.msra.mxu0 %v375_v7  ;;  %v367_v17 = vsel %vm335_vm8, %v319_v62, %v351_v8  ;;  %vm338_vm10 = vcmp.ge.f32.partialorder %v322_v9, 0.0  ;;  %v354_v18 = vmul.f32 0.01, %v322_v9  ;;  %v297_v24 = vmul.f32 %v881_v40, %v271_v25 }
  0x99   : > { %v377_v19 = vpack.c.bf16 %v367_v17, %v359_v16  ;;  %v324_v20 = vadd.f32 %v890_v48, %v300_v12  ;;  %v362_v26 = vsel %vm330_vm9, %v314_v42, %v346_v11  ;;  %vm332_vm11 = vcmp.ge.f32.partialorder %v886_v43, 0.0 }
  0x9a   : > { %v370_v27 = vsel %vm338_vm10, %v322_v9, %v354_v18  ;;  %v345_v22 = vmul.f32 0.01, %v313_v10  ;;  %v321_v30 = vadd.f32 %v890_v48, %v297_v24  ;;  %vm329_vm13 = vcmp.ge.f32.partialorder %v313_v10, 0.0 }
  0x9b   : > { %450 = vmatpush1.bf16.msra.mxu1 %v377_v19  ;;  %v380_v28 = vpack.c.bf16 %v370_v27, %v362_v26  ;;  %vm340_vm12 = vcmp.ge.f32.partialorder %v324_v20, 0.0  ;;  %v356_v29 = vmul.f32 0.01, %v324_v20  ;;  %743 = vmatmul.mubr.msk.bf16.vlgmr.msra.gmra.mxu0 %vm388_vm3, %v782_v13  ;;  %v299_v14 = vmul.f32 %v881_v40, %v273_v33 }
  0x9c   : > { %510 = vmatprep.mubr.bf16.mxu0 %v808_v2  ;;  %v364_v25 = vsel %vm332_vm11, %v886_v43, %v348_v23  ;;  %vm337_vm14 = vcmp.ge.f32.partialorder %v321_v30, 0.0  ;;  %v353_v32 = vmul.f32 0.01, %v321_v30  ;;  %v347_v36 = vmul.f32 0.01, %v315_v15 }
  0x9d   : > { %492 = vmatprep.subr.bf16.mxu0 %v380_v28  ;;  %v372_v31 = vsel %vm340_vm12, %v324_v20, %v356_v29  ;;  %v323_v35 = vadd.f32 %v890_v48, %v299_v14  ;;  %v361_v37 = vsel %vm329_vm13, %v313_v10, %v345_v22  ;;  %vm331_vm15 = vcmp.ge.f32.partialorder %v315_v15, 0.0 }
  0x9e   : > { %v382_v34 = vpack.c.bf16 %v372_v31, %v364_v25  ;;  %744 = vmatmul.mubr.msk.bf16.vlgmr.msra.gmra.mxu1 %vm388_vm3, %v782_v13  ;;  %v369_v38 = vsel %vm337_vm14, %v321_v30, %v353_v32  ;;  %v363_v39 = vsel %vm331_vm15, %v315_v15, %v347_v36  ;;  %vm244_vm1 = vcmask 7168  }
  0x9f   : > { %553 = vmatprep.mubr.bf16.mxu1 %v808_v2  ;;  %v379_v21 = vpack.c.bf16 %v369_v38, %v361_v37  ;;  %vm339_vm0 = vcmp.ge.f32.partialorder %v323_v35, 0.0  ;;  %v355_v33 = vmul.f32 0.01, %v323_v35  ;;  %v809_v2 = vmov 0.0  }
  0xa0   : > { %535 = vmatprep.subr.bf16.mxu1 %v382_v34  ;;  %245 = vst.msk [vmem:[%s932_s6] sm:$0xff] %vm244_vm1, %v809_v2  ;;  %246 = vst.msk [vmem:[%s932_s6 + $0x8] sm:$0xff] %vm244_vm1, %v809_v2 }
  0xa1   : > { %493 = vmatpush1.bf16.msra.mxu0 %v379_v21  ;;  %v371_v40 = vsel %vm339_vm0, %v323_v35, %v355_v33  ;;  %247 = vst.msk [vmem:[%s238_s9] sm:$0xff] %vm244_vm1, %v809_v2  ;;  %248 = vst.msk [vmem:[%s238_s9 + $0x8] sm:$0xff] %vm244_vm1, %v809_v2 }
  0xa2   : > { %v381_v41 = vpack.c.bf16 %v371_v40, %v363_v39 }
  0xa4   : > { %536 = vmatpush1.bf16.msra.mxu1 %v381_v41  ;;  %745 = vmatmul.mubr.msk.bf16.vlgmr.msra.gmra.mxu0 %vm388_vm3, %v782_v13 }
  0xa7   : > { %746 = vmatmul.mubr.msk.bf16.vlgmr.msra.gmra.mxu1 %vm388_vm3, %v782_v13  ;;  %v564_v39 = vld [vmem:[%s932_s6] sm:$0xff] }
 0x15b   : > { %v426_v42 = vpop.f32.mrf.mxu0 }
 0x15c   : > { %v591_v44 = vmul.f32 %v426_v42, %v426_v42 }
 0x15d   : > { %v428_v43 = vpop.f32.mrf.mxu0 }
 0x15e   : > { %v469_v45 = vpop.f32.mrf.mxu1  ;;  %v566_v46 = vadd.f32 %v428_v43, %v426_v42  ;;  %v592_v47 = vmul.f32 %v428_v43, %v428_v43  ;;  %v589_v42 = vld [vmem:[%s238_s9] sm:$0xff]  ;;  %v565_v43 = vld [vmem:[%s932_s6 + $0x8] sm:$0xff] }
 0x15f   : > { %v593_v48 = vmul.f32 %v469_v45, %v469_v45  ;;  %v430_v49 = vpop.f32.mrf.mxu0 }
 0x160   : > { %v607_v50 = vadd.f32 %v592_v47, %v591_v44  ;;  %v471_v51 = vpop.f32.mrf.mxu1  ;;  %v567_v52 = vadd.f32 %v566_v46, %v469_v45  ;;  %v599_v54 = vmul.f32 %v430_v49, %v430_v49 }
 0x161   : > { %v594_v53 = vmul.f32 %v471_v51, %v471_v51  ;;  %v432_v55 = vpop.f32.mrf.mxu0 }
 0x162   : > { %v568_v56 = vadd.f32 %v567_v52, %v471_v51  ;;  %v608_v57 = vadd.f32 %v607_v50, %v593_v48  ;;  %v473_v58 = vpop.f32.mrf.mxu1  ;;  %v575_v59 = vadd.f32 %v432_v55, %v430_v49  ;;  %v600_v60 = vmul.f32 %v432_v55, %v432_v55  ;;  %v590_v48 = vld [vmem:[%s238_s9 + $0x8] sm:$0xff] }
 0x163   : > { %v601_v62 = vmul.f32 %v473_v58, %v473_v58 }
 0x164   : > { %v609_v61 = vadd.f32 %v608_v57, %v594_v53  ;;  %v616_v63 = vadd.f32 %v600_v60, %v599_v54  ;;  %v475_v0 = vpop.f32.mrf.mxu1  ;;  %v576_v1 = vadd.f32 %v575_v59, %v473_v58  ;;  %v512_v4 = vpop.f32.mrf.mxu0 }
 0x165   : > { %v602_v3 = vmul.f32 %v475_v0, %v475_v0  ;;  %v569_v7 = vadd.f32 %v568_v56, %v512_v4  ;;  %v595_v8 = vmul.f32 %v512_v4, %v512_v4 }
 0x166   : > { %v577_v5 = vadd.f32 %v576_v1, %v475_v0  ;;  %v617_v6 = vadd.f32 %v616_v63, %v601_v62  ;;  %v514_v9 = vpop.f32.mrf.mxu0 }
 0x167   : > { %v610_v11 = vadd.f32 %v609_v61, %v595_v8  ;;  %v555_v12 = vpop.f32.mrf.mxu1  ;;  %v570_v13 = vadd.f32 %v569_v7, %v514_v9  ;;  %v596_v15 = vmul.f32 %v514_v9, %v514_v9 }
 0x168   : > { %v618_v10 = vadd.f32 %v617_v6, %v602_v3  ;;  %v597_v16 = vmul.f32 %v555_v12, %v555_v12  ;;  %v516_v17 = vpop.f32.mrf.mxu0 }
 0x169   : > { %v611_v18 = vadd.f32 %v610_v11, %v596_v15  ;;  %v557_v19 = vpop.f32.mrf.mxu1  ;;  %v578_v20 = vadd.f32 %v577_v5, %v516_v17  ;;  %v603_v23 = vmul.f32 %v516_v17, %v516_v17  ;;  %v571_v24 = vadd.f32 %v570_v13, %v555_v12 }
 0x16a   : > { %v518_v26 = vpop.f32.mrf.mxu0  ;;  %v598_v25 = vmul.f32 %v557_v19, %v557_v19 }
 0x16b   : > { %v619_v27 = vadd.f32 %v618_v10, %v603_v23  ;;  %v559_v22 = vpop.f32.mrf.mxu1  ;;  %v579_v28 = vadd.f32 %v578_v20, %v518_v26  ;;  %v604_v29 = vmul.f32 %v518_v26, %v518_v26  ;;  %v572_v30 = vadd.f32 %v571_v24, %v557_v19 }
 0x16c   : > { %v612_v14 = vadd.f32 %v611_v18, %v597_v16  ;;  %v605_v31 = vmul.f32 %v559_v22, %v559_v22 }
 0x16d   : > { %v620_v32 = vadd.f32 %v619_v27, %v604_v29  ;;  %v580_v34 = vadd.f32 %v579_v28, %v559_v22  ;;  %573 = vadd.xlane.f32.xlu0 %v572_v30  ;;  %v561_v35 = vpop.f32.mrf.mxu1 }
 0x16e   : > { %v613_v37 = vadd.f32 %v612_v14, %v598_v25  ;;  %v606_v21 = vmul.f32 %v561_v35, %v561_v35 }
 0x16f   : > { %v581_v36 = vadd.f32 %v580_v34, %v561_v35  ;;  %v621_v38 = vadd.f32 %v620_v32, %v605_v31 }
 0x171   : > { %614 = vadd.xlane.f32.xlu0 %v613_v37  ;;  %582 = vadd.xlane.f32.xlu1 %v581_v36  ;;  %v622_v33 = vadd.f32 %v621_v38, %v606_v21 }
 0x175   : > { %623 = vadd.xlane.f32.xlu0 %v622_v33 }
 0x1f6   : > { %v574_v40 = vpop.xlane.xlu0 %573 }
 0x1f7   : > { %v584_v41 = vadd.f32 %v574_v40, %v564_v39 }
 0x1f9   : > { %587 = vst.msk [vmem:[%s932_s6] sm:$0xff] %vm244_vm1, %v584_v41 }
 0x1fa   : > { %v615_v44 = vpop.xlane.xlu0 %614  ;;  %v583_v45 = vpop.xlane.xlu1 %582 }
 0x1fb   : > { %v625_v46 = vadd.f32 %v615_v44, %v589_v42  ;;  %v585_v47 = vadd.f32 %v583_v45, %v565_v43 }
 0x1fd   : > { %627 = vst.msk [vmem:[%s238_s9] sm:$0xff] %vm244_vm1, %v625_v46  ;;  %588 = vst.msk [vmem:[%s932_s6 + $0x8] sm:$0xff] %vm244_vm1, %v585_v47 }
 0x1fe   : > { %v624_v49 = vpop.xlane.xlu0 %623 }
 0x1ff   : > { %v626_v50 = vadd.f32 %v624_v49, %v590_v48 }
 0x201   : > { %628 = vst.msk [vmem:[%s238_s9 + $0x8] sm:$0xff] %vm244_vm1, %v626_v50 }
 0x202 PF: > { %s15_s17 = sadd.s32 1, %s805_s17   ;;  %s971_s15 = smov %s801_s16 }
 0x203   : > { %p12_p5 = scmp.ge.s32.totalorder %s15_s17, 4   ;;  %s972_s16 = smov %s974_s18 }
 0x205   :  { %14 = sbr.rel (!%p12_p5) target bundleno = 2 (0x2), region = 78 }

// kernel: resnet_basic_block.5
= control target key start
LH: loop header
LB: loop body
LE: loop exit
PB: predicated region body
PF: predicated region fallthrough
CT: control target
= control target key end

     0   :  { %10 = vsyncpa [#allocation3], 0  ;;  %s1347_s0 = inlined_call_operand.vmem [shape: bf16[2,16,1024], index: 0, kind: input, shape index: {}]   ;;  %s1348_s1 = inlined_call_operand.vmem [shape: f32[2,16,1024], index: 1, kind: input, shape index: {}]   ;;  %s1349_s2 = inlined_call_operand.vmem [shape: f32[16,2], index: 2, kind: input, shape index: {}]   ;;  %s1350_s3 = inlined_call_operand.vmem [shape: f32[16,2], index: 3, kind: input, shape index: {}]   ;;  %s1351_s4 = inlined_call_operand.vmem [shape: bf16[16,16], index: 4, kind: input, shape index: {}]   ;;  %s1352_s5 = inlined_call_operand.hbm [shape: f32[2,16,1024], index: 5, kind: output, shape index: {}]  }
   0x1   :  { %12 = vsyncpa [#allocation3 + $0x1], 0  ;;  %s1068_s18 = smov 0   ;;  %s1070_s19 = smov 0  }
   0x2   :  { %s1072_s20 = smov 0   ;;  %s1074_s21 = smov 0  }
   0x3   :  { %s1076_s22 = smov 0   ;;  %s1078_s23 = smov 0  }
   0x4 LB: > { %s867_s24 = sadd.s32 4294967295, %s1031_s23   ;;  %s868_s25 = sadd.s32 4294967294, %s1031_s23   ;;  %s1031_s23 = sphi %s1078_s23, %s18_s23   ;;  %s1027_s22 = sphi %s1076_s22, %s1359_s22   ;;  %s1023_s21 = sphi %s1074_s21, %s1358_s21   ;;  %s1019_s20 = sphi %s1072_s20, %s1357_s20   ;;  %s1015_s19 = sphi %s1070_s19, %s1356_s19   ;;  %s1011_s18 = sphi %s1068_s18, %s1355_s18  }
   0x5   : > { %s30_s26 = sadd.s32 1, %s1027_s22  ;;  %s158_s27 = sadd.s32 1, %s1019_s20 }
   0x6   : > { %p32_p0 = scmp.ge.s32.totalorder %s30_s26, 2  ;;  %p168_p1 = scmp.ne.s32.totalorder %s1019_s20, %s1015_s19 }
   0x7   : > { %p169_p2 = scmp.eq.s32.totalorder %s867_s24, 1  ;;  %p174_p3 = scmp.ne.s32.totalorder %s1015_s19, %s1011_s18 }
   0x8   : > { %s1361_s26 = smov (%p32_p0, %s30_s26), 0  ;;  %p175_p5 = scmp.eq.s32.totalorder %s868_s25, 1 }
   0x9   : > { %p1108_p4 = por %p169_p2, %p168_p1  ;;  %s153_s29 = ssub.s32 %s1027_s22, %s1361_s26 }
   0xa   : > { %p871_p6 = scmp.ge.s32.totalorder %s1031_s23, 1  ;;  %p156_p7 = scmp.eq.s32.totalorder %s153_s29, 0 }
   0xb   : > { %p1115_p8 = por %p175_p5, %p174_p3  ;;  %p228_p9 = scmp.lt.s32.totalorder %s1031_s23, 3 }
   0xc   : > { %s1121_s6 = scalar_select %p156_p7, %s1019_s20, %s158_s27  }
   0xd   : > { %p229_p10 = pnand %p871_p6, %p228_p9 }
   0xe   : > { %p270_p11 = scmp.lt.s32.totalorder (!%p229_p10), %s1023_s21, 1  ;;  %s266_s11 = sand.u32 (!%p229_p10), 1, %s1015_s19  }
   0xf   : > { %232 = sbr.rel (%p229_p10) target bundleno = 402 (0x192), region = 40  ;;  %s1225_s12 = sshll.u32 (!%p229_p10), %s266_s11, 7 }
  0x10   : > { %s1243_s13 = scalar_lea.vmem (!%p229_p10), [#allocation2], %s1225_s12  ;;  %s889_s14 = sshll.u32 (!%p229_p10), %s1023_s21, 11 }
  0x11   : > { %s1294_s24 = scalar_lea.hbm (!%p229_p10), %s1352_s5, %s889_s14  ;;  %s1035_s27 = smov (!%p229_p10), [#allocation2]  }
  0x12   : > { %s959_s29 = sshll.u32 (!%p229_p10), %s1035_s27, 4  ;;  %s960_s29 = int_to_ptr.vmem [resolvable:$false] %s959_s29 }
  0x14   : > { %v291_v0 = vld [vmem:[%s1349_s2] sm:$0xff]  ;;  %v1033_v1 = vmov 1   ;;  %v1034_v2 = vmov 0   ;;  %v292_v3 = vld [vmem:[%s1349_s2 + $0x8] sm:$0xff]  ;;  %s1141_s15 = scalar_select %p270_p11, %s1023_s21, 1  ;;  %vm432_vm3 = vcmask 130048  }
  0x15   : > { %950 = vset.pattern.permute.xlu1 %v1033_v1  ;;  %949 = vset.pattern.permute.xlu0 %v1034_v2  ;;  %v293_v4 = vld [vmem:[%s1350_s3] sm:$0xff]  ;;  %v294_v5 = vld [vmem:[%s1350_s3 + $0x8] sm:$0xff]  ;;  %s1302_s21 = scalar_lea.sflag [#allocation3], %s266_s11 }
  0x16   : > { %346 = vperm.xlu1 %950, %v291_v0   ;;  %321 = vperm.xlu0 %949, %v291_v0   ;;  %s887_s16 = sshll.u32 %s1141_s15, 6  ;;  %s888_s7 = sshll.u32 %s1141_s15, 7 }
  0x17   : > { %468 = vmatprep.mubr.bf16.mxu0 %v1034_v2  ;;  %511 = vmatprep.mubr.bf16.mxu1 %v1034_v2  ;;  %s277_s25 = scalar_lea.vmem %s1347_s0, %s887_s16  ;;  %s1213_s10 = scalar_lea.vmem %s1348_s1, %s888_s7 }
  0x18   : > { %v295_v6 = vld [vmem:[%s277_s25] sm:$0xff]  ;;  %v296_v7 = vld [vmem:[%s277_s25 + $0x8] sm:$0xff]  ;;  %v297_v8 = vld [vmem:[%s277_s25 + $0x10] sm:$0xff]  ;;  %s770_s15 = sshll.u32 %s1243_s13, 4  ;;  %s961_s7 = scalar_lea.vmem %s960_s29, 4096  ;;  %s1296_s15 = int_to_ptr.vmem [resolvable:$true] %s770_s15 }
  0x19   : > { %v298_v9 = vld [vmem:[%s277_s25 + $0x18] sm:$0xff]  ;;  %v299_v10 = vld [vmem:[%s277_s25 + $0x20] sm:$0xff]  ;;  %v300_v11 = vld [vmem:[%s277_s25 + $0x28] sm:$0xff]  ;;  %v304_v12 = vunpack.c.h.bf16 %v295_v6  ;;  %v306_v13 = vunpack.c.h.bf16 %v296_v7  ;;  %v303_v14 = vunpack.c.l.bf16 %v295_v6  ;;  %v305_v15 = vunpack.c.l.bf16 %v296_v7  ;;  %p962_p1 = scmp.lt.s32.totalorder %s1296_s15, %s960_s29 }
  0x1a   : > { %350 = vperm.xlu1 %950, %v292_v3   ;;  %326 = vperm.xlu0 %949, %v292_v3   ;;  %v1147_v16 = vld [vmem:[%s277_s25 + $0x30] sm:$0xff]  ;;  %v308_v17 = vunpack.c.h.bf16 %v297_v8  ;;  %v310_v18 = vunpack.c.h.bf16 %v298_v9  ;;  %v312_v19 = vunpack.c.h.bf16 %v299_v10  ;;  %v314_v20 = vunpack.c.h.bf16 %v300_v11  ;;  %v1149_v23 = vld [vmem:[%s277_s25 + $0x38] sm:$0xff]  ;;  %s955_s25 = scalar_lea.vmem %s1296_s15, 2048 }
  0x1b   : > { %v311_v21 = vunpack.c.l.bf16 %v299_v10  ;;  %v307_v22 = vunpack.c.l.bf16 %v297_v8  ;;  %v313_v26 = vunpack.c.l.bf16 %v300_v11  ;;  %v315_v27 = vunpack.c.l.bf16 %v1147_v16  ;;  %p956_p12 = scmp.ne.s32.totalorder %s1296_s15, %s955_s25  ;;  %p963_p2 = scmp.lt.s32.totalorder %s961_s7, %s955_s25 }
  0x1c   : > { %v316_v28 = vunpack.c.h.bf16 %v1147_v16  ;;  %v309_v29 = vunpack.c.l.bf16 %v298_v9  ;;  %v317_v35 = vunpack.c.l.bf16 %v1149_v23  ;;  %v318_v36 = vunpack.c.h.bf16 %v1149_v23 }
  0x1d   : > { %p957_p13 = pnand %p956_p12, %p1108_p4  ;;  %p964_p3 = por %p963_p2, %p962_p1 }
  0x1e   : > { %610 = vperm.xlu0 %949, %v293_v4   ;;  %951 = vset.pattern.permute.xlu1 %v1034_v2 }
  0x1f   : > { %615 = vperm.xlu1 %951, %v294_v5   ;;  %p958_p0 = pneg %p957_p13 }
  0x21   : > { %p965_p5 = pnand %p964_p3, %p958_p0 }
  0x22   : > { %952 = vset.pattern.permute.xlu0 %v1033_v1 }
  0x23   : > { %635 = vperm.xlu0 %952, %v293_v4   ;;  %953 = vset.pattern.permute.xlu1 %v1033_v1 }
  0x24   : > { %639 = vperm.xlu1 %953, %v294_v5  }
  0x91   : > { %v1151_v24 = vpop.permute.xlu1 %346  ;;  %v322_v25 = vpop.permute.xlu0 %321 }
  0x92   : > { %v330_v30 = vmul.f32 %v322_v25, %v304_v12  ;;  %v332_v31 = vmul.f32 %v322_v25, %v306_v13  ;;  %v329_v32 = vmul.f32 %v322_v25, %v303_v14  ;;  %v331_v33 = vmul.f32 %v322_v25, %v305_v15  ;;  %v954_v15 = vld [vmem:[%s1351_s4] sm:$0xff]  }
  0x93   : > { %v334_v34 = vmul.f32 %v322_v25, %v308_v17  ;;  %v336_v37 = vmul.f32 %v322_v25, %v310_v18  ;;  %v333_v41 = vmul.f32 %v322_v25, %v307_v22  ;;  %v335_v46 = vmul.f32 %v322_v25, %v309_v29 }
  0x94   : > { %v354_v38 = vadd.f32 %v1151_v24, %v330_v30  ;;  %v356_v39 = vadd.f32 %v1151_v24, %v332_v31  ;;  %v353_v40 = vadd.f32 %v1151_v24, %v329_v32  ;;  %v355_v43 = vadd.f32 %v1151_v24, %v331_v33 }
  0x95   : > { %v1160_v42 = vpop.permute.xlu0 %326  ;;  %v358_v44 = vadd.f32 %v1151_v24, %v334_v34  ;;  %v1165_v45 = vadd.f32 %v1151_v24, %v336_v37  ;;  %v1169_v50 = vpop.permute.xlu1 %350  ;;  %v357_v12 = vadd.f32 %v1151_v24, %v333_v41  ;;  %v359_v17 = vadd.f32 %v1151_v24, %v335_v46 }
  0x96   : > { %v338_v47 = vmul.f32 %v1160_v42, %v312_v19  ;;  %vm370_vm0 = vcmp.ge.f32.partialorder %v354_v38, 0.0  ;;  %v386_v48 = vmul.f32 0.01, %v354_v38  ;;  %v340_v49 = vmul.f32 %v1160_v42, %v314_v20 }
  0x97   : > { %vm372_vm1 = vcmp.ge.f32.partialorder %v356_v39, 0.0  ;;  %v388_v51 = vmul.f32 0.01, %v356_v39  ;;  %v337_v52 = vmul.f32 %v1160_v42, %v311_v21  ;;  %vm369_vm2 = vcmp.ge.f32.partialorder %v353_v40, 0.0 }
  0x98   : > { %v362_v53 = vadd.f32 %v1169_v50, %v338_v47  ;;  %v402_v54 = vsel %vm370_vm0, %v354_v38, %v386_v48  ;;  %v364_v55 = vadd.f32 %v1169_v50, %v340_v49  ;;  %v385_v56 = vmul.f32 0.01, %v353_v40  ;;  %v658_v48 = vld [vmem:[%s1213_s10] sm:$0xff] }
  0x99   : > { %v404_v57 = vsel %vm372_vm1, %v356_v39, %v388_v51  ;;  %v361_v58 = vadd.f32 %v1169_v50, %v337_v52  ;;  %v339_v59 = vmul.f32 %v1160_v42, %v313_v26  ;;  %vm371_vm4 = vcmp.ge.f32.partialorder %v355_v43, 0.0 }
  0x9a   : > { %vm378_vm5 = vcmp.ge.f32.partialorder %v362_v53, 0.0  ;;  %v394_v60 = vmul.f32 0.01, %v362_v53  ;;  %vm380_vm6 = vcmp.ge.f32.partialorder %v364_v55, 0.0  ;;  %v396_v61 = vmul.f32 0.01, %v364_v55 }
  0x9b   : > { %vm377_vm7 = vcmp.ge.f32.partialorder %v361_v58, 0.0  ;;  %v393_v62 = vmul.f32 0.01, %v361_v58  ;;  %v401_v63 = vsel %vm369_vm2, %v353_v40, %v385_v56  ;;  %v363_v0 = vadd.f32 %v1169_v50, %v339_v59 }
  0x9c   : > { %v410_v1 = vsel %vm378_vm5, %v362_v53, %v394_v60  ;;  %v412_v3 = vsel %vm380_vm6, %v364_v55, %v396_v61  ;;  %v387_v4 = vmul.f32 0.01, %v355_v43  ;;  %v342_v5 = vmul.f32 %v1160_v42, %v316_v28 }
  0x9d   : > { %v420_v6 = vpack.c.bf16 %v410_v1, %v402_v54  ;;  %v422_v7 = vpack.c.bf16 %v412_v3, %v404_v57  ;;  %v409_v8 = vsel %vm377_vm7, %v361_v58, %v393_v62  ;;  %vm379_vm8 = vcmp.ge.f32.partialorder %v363_v0, 0.0  ;;  %v659_v54 = vld [vmem:[%s1213_s10 + $0x8] sm:$0xff]  ;;  %v660_v57 = vld [vmem:[%s1213_s10 + $0x10] sm:$0xff] }
  0x9e   : > { %v419_v9 = vpack.c.bf16 %v409_v8, %v401_v63  ;;  %v395_v10 = vmul.f32 0.01, %v363_v0  ;;  %v366_v11 = vadd.f32 %v1169_v50, %v342_v5  ;;  %vm374_vm9 = vcmp.ge.f32.partialorder %v358_v44, 0.0  ;;  %v661_v5 = vld [vmem:[%s1213_s10 + $0x18] sm:$0xff] }
  0x9f   : > { %450 = vmatprep.subr.bf16.mxu0 %v420_v6  ;;  %493 = vmatprep.subr.bf16.mxu1 %v422_v7  ;;  %v390_v13 = vmul.f32 0.01, %v358_v44  ;;  %v344_v14 = vmul.f32 %v1160_v42, %v318_v36  ;;  %v403_v18 = vsel %vm371_vm4, %v355_v43, %v387_v4  ;;  %v392_v25 = vmul.f32 0.01, %v1165_v45 }
  0xa0   : > { %451 = vmatpush1.bf16.msra.mxu0 %v419_v9  ;;  %v411_v19 = vsel %vm379_vm8, %v363_v0, %v395_v10  ;;  %vm382_vm10 = vcmp.ge.f32.partialorder %v366_v11, 0.0  ;;  %v398_v20 = vmul.f32 0.01, %v366_v11  ;;  %v341_v26 = vmul.f32 %v1160_v42, %v315_v27  ;;  %v666_v0 = vld [vmem:[%s1213_s10 + $0x40] sm:$0xff] }
  0xa1   : > { %v421_v21 = vpack.c.bf16 %v411_v19, %v403_v18  ;;  %v368_v22 = vadd.f32 %v1169_v50, %v344_v14  ;;  %v406_v28 = vsel %vm374_vm9, %v358_v44, %v390_v13  ;;  %vm376_vm11 = vcmp.ge.f32.partialorder %v1165_v45, 0.0  ;;  %v1205_v44 = vpop.permute.xlu0 %610  ;;  %v668_v14 = vld [vmem:[%s1213_s10 + $0x50] sm:$0xff] }
  0xa2   : > { %v414_v29 = vsel %vm382_vm10, %v366_v11, %v398_v20  ;;  %v389_v24 = vmul.f32 0.01, %v357_v12  ;;  %v365_v32 = vadd.f32 %v1169_v50, %v341_v26  ;;  %vm373_vm13 = vcmp.ge.f32.partialorder %v357_v12, 0.0 }
  0xa3   : > { %494 = vmatpush1.bf16.msra.mxu1 %v421_v21  ;;  %v424_v30 = vpack.c.bf16 %v414_v29, %v406_v28  ;;  %vm384_vm12 = vcmp.ge.f32.partialorder %v368_v22, 0.0  ;;  %v400_v31 = vmul.f32 0.01, %v368_v22  ;;  %878 = vmatmul.mubr.msk.bf16.vlgmr.msra.gmra.mxu0 %vm432_vm3, %v954_v15  ;;  %v343_v16 = vmul.f32 %v1160_v42, %v317_v35  ;;  %v667_v21 = vld [vmem:[%s1213_s10 + $0x48] sm:$0xff] }
  0xa4   : > { %554 = vmatprep.mubr.bf16.mxu0 %v1034_v2  ;;  %v408_v27 = vsel %vm376_vm11, %v1165_v45, %v392_v25  ;;  %vm381_vm14 = vcmp.ge.f32.partialorder %v365_v32, 0.0  ;;  %v397_v34 = vmul.f32 0.01, %v365_v32  ;;  %v391_v38 = vmul.f32 0.01, %v359_v17  ;;  %v1208_v45 = vpop.permute.xlu1 %615 }
  0xa5   : > { %536 = vmatprep.subr.bf16.mxu0 %v424_v30  ;;  %v416_v33 = vsel %vm384_vm12, %v368_v22, %v400_v31  ;;  %v367_v37 = vadd.f32 %v1169_v50, %v343_v16  ;;  %v405_v39 = vsel %vm373_vm13, %v357_v12, %v389_v24  ;;  %vm375_vm15 = vcmp.ge.f32.partialorder %v359_v17, 0.0  ;;  %v1215_v46 = vpop.permute.xlu0 %635 }
  0xa6   : > { %v426_v36 = vpack.c.bf16 %v416_v33, %v408_v27  ;;  %879 = vmatmul.mubr.msk.bf16.vlgmr.msra.gmra.mxu1 %vm432_vm3, %v954_v15  ;;  %v413_v40 = vsel %vm381_vm14, %v365_v32, %v397_v34  ;;  %v407_v41 = vsel %vm375_vm15, %v359_v17, %v391_v38  ;;  %v669_v38 = vld [vmem:[%s1213_s10 + $0x58] sm:$0xff] }
  0xa7   : > { %597 = vmatprep.mubr.bf16.mxu1 %v1034_v2  ;;  %v423_v23 = vpack.c.bf16 %v413_v40, %v405_v39  ;;  %vm383_vm0 = vcmp.ge.f32.partialorder %v367_v37, 0.0  ;;  %v399_v35 = vmul.f32 0.01, %v367_v37  ;;  %v662_v39 = vld [vmem:[%s1213_s10 + $0x20] sm:$0xff] }
  0xa8   : > { %579 = vmatprep.subr.bf16.mxu1 %v426_v36  ;;  %v1228_v56 = vpop.permute.xlu1 %639 }
  0xa9   : > { %537 = vmatpush1.bf16.msra.mxu0 %v423_v23  ;;  %v415_v42 = vsel %vm383_vm0, %v367_v37, %v399_v35 }
  0xaa   : > { %v425_v43 = vpack.c.bf16 %v415_v42, %v407_v41 }
  0xac   : > { %580 = vmatpush1.bf16.msra.mxu1 %v425_v43  ;;  %880 = vmatmul.mubr.msk.bf16.vlgmr.msra.gmra.mxu0 %vm432_vm3, %v954_v15  ;;  %v664_v43 = vld [vmem:[%s1213_s10 + $0x30] sm:$0xff] }
  0xaf   : > { %881 = vmatmul.mubr.msk.bf16.vlgmr.msra.gmra.mxu1 %vm432_vm3, %v954_v15 }
 0x163   : > { %v470_v2 = vpop.f32.mrf.mxu0 }
 0x164   : > { %v618_v47 = vmul.f32 %v1205_v44, %v470_v2 }
 0x165   : > { %v472_v49 = vpop.f32.mrf.mxu0 }
 0x166   : > { %v513_v50 = vpop.f32.mrf.mxu1  ;;  %v642_v51 = vadd.f32 %v1215_v46, %v618_v47  ;;  %v619_v52 = vmul.f32 %v1205_v44, %v472_v49 }
 0x167   : > { %v620_v53 = vmul.f32 %v1205_v44, %v513_v50  ;;  %v474_v55 = vpop.f32.mrf.mxu0 }
 0x168   : > { %v674_v58 = vadd.f32 %v658_v48, %v642_v51  ;;  %v643_v59 = vadd.f32 %v1215_v46, %v619_v52  ;;  %v515_v60 = vpop.f32.mrf.mxu1  ;;  %v626_v61 = vmul.f32 %v1208_v45, %v474_v55  ;;  %v665_v55 = vld [vmem:[%s1213_s10 + $0x38] sm:$0xff] }
 0x169   : > { %v644_v62 = vadd.f32 %v1215_v46, %v620_v53  ;;  %v621_v63 = vmul.f32 %v1205_v44, %v515_v60  ;;  %v476_v1 = vpop.f32.mrf.mxu0 }
 0x16a   : > { %vm690_vm1 = vcmp.ge.f32.partialorder %v674_v58, 0.0  ;;  %v706_v3 = vmul.f32 0.01, %v674_v58  ;;  %v675_v4 = vadd.f32 %v659_v54, %v643_v59  ;;  %v517_v6 = vpop.f32.mrf.mxu1  ;;  %v650_v7 = vadd.f32 %v1228_v56, %v626_v61  ;;  %v663_v54 = vld [vmem:[%s1213_s10 + $0x28] sm:$0xff] }
 0x16b   : > { %v676_v8 = vadd.f32 %v660_v57, %v644_v62  ;;  %v645_v9 = vadd.f32 %v1215_v46, %v621_v63  ;;  %v628_v10 = vmul.f32 %v1208_v45, %v517_v6  ;;  %v627_v11 = vmul.f32 %v1208_v45, %v476_v1 }
 0x16c   : > { %v722_v12 = vsel %vm690_vm1, %v674_v58, %v706_v3  ;;  %vm691_vm2 = vcmp.ge.f32.partialorder %v675_v4, 0.0  ;;  %v707_v13 = vmul.f32 0.01, %v675_v4  ;;  %v682_v15 = vadd.f32 %v666_v0, %v650_v7  ;;  %v519_v17 = vpop.f32.mrf.mxu1  ;;  %v556_v22 = vpop.f32.mrf.mxu0 }
 0x16d   : > { %vm692_vm3 = vcmp.ge.f32.partialorder %v676_v8, 0.0  ;;  %v708_v18 = vmul.f32 0.01, %v676_v8  ;;  %738 = vst [vmem:[%s1243_s13] sm:$0xff] %v722_v12  ;;  %v677_v19 = vadd.f32 %v661_v5, %v645_v9  ;;  %v652_v20 = vadd.f32 %v1228_v56, %v628_v10  ;;  %v672_v5 = vld [vmem:[%s1213_s10 + $0x70] sm:$0xff] }
 0x16e   : > { %v723_v25 = vsel %vm691_vm2, %v675_v4, %v707_v13  ;;  %vm698_vm4 = vcmp.ge.f32.partialorder %v682_v15, 0.0  ;;  %v714_v26 = vmul.f32 0.01, %v682_v15  ;;  %v651_v28 = vadd.f32 %v1228_v56, %v627_v11  ;;  %v558_v31 = vpop.f32.mrf.mxu0  ;;  %v670_v4 = vld [vmem:[%s1213_s10 + $0x60] sm:$0xff] }
 0x16f   : > { %v724_v29 = vsel %vm692_vm3, %v676_v8, %v708_v18  ;;  %739 = vst [vmem:[%s1243_s13 + $0x8] sm:$0xff] %v723_v25  ;;  %vm693_vm5 = vcmp.ge.f32.partialorder %v677_v19, 0.0  ;;  %v709_v24 = vmul.f32 0.01, %v677_v19  ;;  %v684_v30 = vadd.f32 %v668_v14, %v652_v20  ;;  %v599_v34 = vpop.f32.mrf.mxu1  ;;  %v673_v25 = vld [vmem:[%s1213_s10 + $0x78] sm:$0xff] }
 0x170   : > { %740 = vst [vmem:[%s1243_s13 + $0x10] sm:$0xff] %v724_v29  ;;  %v730_v32 = vsel %vm698_vm4, %v682_v15, %v714_v26  ;;  %v683_v16 = vadd.f32 %v667_v21, %v651_v28  ;;  %v629_v27 = vmul.f32 %v1208_v45, %v519_v17  ;;  %v622_v33 = vmul.f32 %v1205_v44, %v556_v22  ;;  %v560_v23 = vpop.f32.mrf.mxu0  ;;  %v671_v22 = vld [vmem:[%s1213_s10 + $0x68] sm:$0xff] }
 0x171   : > { %v725_v36 = vsel %vm693_vm5, %v677_v19, %v709_v24  ;;  %vm700_vm6 = vcmp.ge.f32.partialorder %v684_v30, 0.0  ;;  %v716_v37 = vmul.f32 0.01, %v684_v30  ;;  %746 = vst [vmem:[%s1243_s13 + $0x40] sm:$0xff] %v730_v32  ;;  %v624_v40 = vmul.f32 %v1205_v44, %v599_v34  ;;  %v601_v2 = vpop.f32.mrf.mxu1 }
 0x172   : > { %741 = vst [vmem:[%s1243_s13 + $0x18] sm:$0xff] %v725_v36  ;;  %vm699_vm7 = vcmp.ge.f32.partialorder %v683_v16, 0.0  ;;  %v715_v35 = vmul.f32 0.01, %v683_v16  ;;  %v653_v41 = vadd.f32 %v1228_v56, %v629_v27  ;;  %v646_v42 = vadd.f32 %v1215_v46, %v622_v33  ;;  %v562_v6 = vpop.f32.mrf.mxu0 }
 0x173   : > { %v732_v47 = vsel %vm700_vm6, %v684_v30, %v716_v37  ;;  %v648_v48 = vadd.f32 %v1215_v46, %v624_v40  ;;  %v623_v49 = vmul.f32 %v1205_v44, %v558_v31  ;;  %v625_v50 = vmul.f32 %v1205_v44, %v601_v2  ;;  %v603_v58 = vpop.f32.mrf.mxu1 }
 0x174   : > { %748 = vst [vmem:[%s1243_s13 + $0x50] sm:$0xff] %v732_v47  ;;  %v731_v51 = vsel %vm699_vm7, %v683_v16, %v715_v35  ;;  %v685_v52 = vadd.f32 %v669_v38, %v653_v41  ;;  %v678_v53 = vadd.f32 %v662_v39, %v646_v42  ;;  %v630_v57 = vmul.f32 %v1208_v45, %v560_v23 }
 0x175   : > { %747 = vst [vmem:[%s1243_s13 + $0x48] sm:$0xff] %v731_v51  ;;  %v680_v59 = vadd.f32 %v664_v43, %v648_v48  ;;  %v647_v60 = vadd.f32 %v1215_v46, %v623_v49  ;;  %v649_v61 = vadd.f32 %v1215_v46, %v625_v50  ;;  %v632_v62 = vmul.f32 %v1208_v45, %v603_v58  ;;  %v605_v10 = vpop.f32.mrf.mxu1 }
 0x176   : > { %vm701_vm8 = vcmp.ge.f32.partialorder %v685_v52, 0.0  ;;  %v717_v44 = vmul.f32 0.01, %v685_v52  ;;  %vm694_vm9 = vcmp.ge.f32.partialorder %v678_v53, 0.0  ;;  %v710_v63 = vmul.f32 0.01, %v678_v53 }
 0x177   : > { %vm696_vm10 = vcmp.ge.f32.partialorder %v680_v59, 0.0  ;;  %v712_v0 = vmul.f32 0.01, %v680_v59  ;;  %v679_v1 = vadd.f32 %v663_v54, %v647_v60  ;;  %v681_v3 = vadd.f32 %v665_v55, %v649_v61 }
 0x178   : > { %v733_v7 = vsel %vm701_vm8, %v685_v52, %v717_v44  ;;  %v726_v8 = vsel %vm694_vm9, %v678_v53, %v710_v63  ;;  %v654_v46 = vadd.f32 %v1228_v56, %v630_v57  ;;  %v656_v9 = vadd.f32 %v1228_v56, %v632_v62 }
 0x179   : > { %749 = vst [vmem:[%s1243_s13 + $0x58] sm:$0xff] %v733_v7  ;;  %742 = vst [vmem:[%s1243_s13 + $0x20] sm:$0xff] %v726_v8  ;;  %v728_v11 = vsel %vm696_vm10, %v680_v59, %v712_v0  ;;  %vm695_vm11 = vcmp.ge.f32.partialorder %v679_v1, 0.0  ;;  %v711_v12 = vmul.f32 0.01, %v679_v1  ;;  %vm697_vm12 = vcmp.ge.f32.partialorder %v681_v3, 0.0 }
 0x17a   : > { %744 = vst [vmem:[%s1243_s13 + $0x30] sm:$0xff] %v728_v11  ;;  %v713_v13 = vmul.f32 0.01, %v681_v3  ;;  %v686_v14 = vadd.f32 %v670_v4, %v654_v46  ;;  %v688_v15 = vadd.f32 %v672_v5, %v656_v9  ;;  %v631_v17 = vmul.f32 %v1208_v45, %v562_v6 }
 0x17b   : > { %v727_v18 = vsel %vm695_vm11, %v679_v1, %v711_v12  ;;  %v633_v19 = vmul.f32 %v1208_v45, %v605_v10 }
 0x17c   : > { %743 = vst [vmem:[%s1243_s13 + $0x28] sm:$0xff] %v727_v18  ;;  %v729_v20 = vsel %vm697_vm12, %v681_v3, %v713_v13  ;;  %vm702_vm13 = vcmp.ge.f32.partialorder %v686_v14, 0.0  ;;  %v718_v21 = vmul.f32 0.01, %v686_v14  ;;  %vm704_vm14 = vcmp.ge.f32.partialorder %v688_v15, 0.0 }
 0x17d   : > { %745 = vst [vmem:[%s1243_s13 + $0x38] sm:$0xff] %v729_v20  ;;  %v720_v26 = vmul.f32 0.01, %v688_v15  ;;  %v655_v28 = vadd.f32 %v1228_v56, %v631_v17  ;;  %v657_v29 = vadd.f32 %v1228_v56, %v633_v19 }
 0x17e   : > { %v734_v24 = vsel %vm702_vm13, %v686_v14, %v718_v21 }
 0x17f   : > { %750 = vst [vmem:[%s1243_s13 + $0x60] sm:$0xff] %v734_v24  ;;  %v736_v45 = vsel %vm704_vm14, %v688_v15, %v720_v26  ;;  %v687_v30 = vadd.f32 %v671_v22, %v655_v28  ;;  %v689_v31 = vadd.f32 %v673_v25, %v657_v29 }
 0x180   : > { %752 = vst [vmem:[%s1243_s13 + $0x70] sm:$0xff] %v736_v45 }
 0x181   : > { %vm703_vm15 = vcmp.ge.f32.partialorder %v687_v30, 0.0  ;;  %v719_v32 = vmul.f32 0.01, %v687_v30  ;;  %vm705_vm0 = vcmp.ge.f32.partialorder %v689_v31, 0.0  ;;  %v721_v16 = vmul.f32 0.01, %v689_v31 }
 0x183   : > { %v735_v56 = vsel %vm703_vm15, %v687_v30, %v719_v32  ;;  %v737_v27 = vsel %vm705_vm0, %v689_v31, %v721_v16 }
 0x184   : > { %751 = vst [vmem:[%s1243_s13 + $0x68] sm:$0xff] %v735_v56  ;;  %753 = vst [vmem:[%s1243_s13 + $0x78] sm:$0xff] %v737_v27 }
 0x185   : > { %968 = shalt.err (!%p965_p5)
}
 0x186   : > { %s969_s8 = scalar_lea.hbm %s1294_s24, 2048  ;;  %s973_s11 = scalar_lea.hbm %s1352_s5, 4096 }
 0x187   : > { %p970_p6 = scmp.ne.s32.totalorder %s1294_s24, %s969_s8  ;;  %p974_p10 = scmp.lt.s32.totalorder %s1294_s24, %s1352_s5 }
 0x188   : > { %p975_p11 = scmp.lt.s32.totalorder %s973_s11, %s969_s8 }
 0x189   : > { %p971_p7 = pnand %p970_p6, %p1108_p4 }
 0x18a   : > { %p976_p12 = por %p975_p11, %p974_p10 }
 0x18b   : > { %p972_p9 = pneg %p971_p7 }
 0x18d   : > { %p977_p13 = pnand %p976_p12, %p972_p9 }
 0x18f   : > { %980 = shalt.err (!%p977_p13)
}
 0x190   : > { %s1036_s14 = smov 1024   ;;  %s1037_s16 = smov 64  }
 0x191   : > { %890 = dma.vmem_to_hbm [thread:$0]  (%p1108_p4), %s1296_s15, 2048, %s1294_s24, %s1302_s21, %s1036_s14, %s1036_s14, %s1037_s16  }
 0x192 PF: > { %p896_p0 = scmp.ge.s32.totalorder %s1031_s23, 2  ;;  %s785_s17 = sand.u32 1, %s1011_s18  }
 0x193   : > { %s786_s25 = scalar_lea.sflag [#allocation3], %s785_s17 }
 0x194   : > { %p893_p1 = pnand %p896_p0, %p1115_p8 }
 0x196   : > { %p894_p2 = pneg %p893_p1 }
 0x198   : > { %1006 = dma.done.wait (%p894_p2), %s786_s25, 2048  }
 0x199   : > { %1008 = vsyncadd (%p894_p2), %s786_s25, 4294965248  ;;  %s18_s23 = sadd.s32 1, %s1031_s23   ;;  %s1355_s18 = smov %s1015_s19 }
 0x19a   : > { %p15_p3 = scmp.ge.s32.totalorder %s18_s23, 4   ;;  %s1356_s19 = smov %s1019_s20 }
 0x19b   : > { %s1357_s20 = smov %s1121_s6  ;;  %s1358_s21 = smov %s1027_s22 }
 0x19c   : > { %s1359_s22 = smov %s1361_s26  ;;  %17 = sbr.rel (!%p15_p3) target bundleno = 4 (0x4), region = 78 }
 0x1a1   :  { %791 = vsyncpa [#allocation3], 1 }
 0x1a2   :  { %793 = vsyncpa [#allocation3 + $0x1], 1 }

</bundles_post_ra>
